<compile_context>
chip_gen: v7x
topology: tpu7x:2x2x1
jax: 0.10.0
libtpu: 0.0.40
codegen_flags: <defaults>
</compile_context>

<pallas_src>
import functools

import jax
import jax.numpy as jnp
import numpy as np
from jax.experimental import pallas as pl
from jax.experimental.pallas import tpu as pltpu


def _lstm_fused_kernel(x_ref, w_ih_ref, w_hh_ref, b_ref, w_lin_ref, b_lin_ref,
                       out_ref, *, seq_len, hidden):
    H = hidden
    S = seq_len

    x = x_ref[...]                                          # (S, H)

    # Hoisted input projection for all timesteps, bias folded in: (S, 4H).
    gates_x = (
        jnp.dot(x, w_ih_ref[...], preferred_element_type=jnp.float32)
        + b_ref[...]
    )

    # One-time lane slices (hoisted out of the recurrence): per-gate planes,
    # each lane-aligned at lanes 0..H-1, so the per-step gate math needs no
    # XLU rotations on the serial critical path.  PyTorch gate order: i,f,g,o.
    gx_i = gates_x[:, 0 * H:1 * H]
    gx_f = gates_x[:, 1 * H:2 * H]
    gx_g = gates_x[:, 2 * H:3 * H]
    gx_o = gates_x[:, 3 * H:4 * H]

    w_hh = w_hh_ref[...]                                    # (H, 4H), load once
    whh_i = w_hh[:, 0 * H:1 * H]
    whh_f = w_hh[:, 1 * H:2 * H]
    whh_g = w_hh[:, 2 * H:3 * H]
    whh_o = w_hh[:, 3 * H:4 * H]

    # Peeled step t = 0: h0 = c0 = 0, so the recurrent dot is zero and the
    # forget gate contributes nothing (f * c0 = 0).
    i0 = jax.nn.sigmoid(gx_i[0:1, :])
    g0 = jnp.tanh(gx_g[0:1, :])
    o0 = jax.nn.sigmoid(gx_o[0:1, :])
    c = i0 * g0                                             # (1, H)
    h = o0 * jnp.tanh(c)                                    # (1, H)
    hs = [h]

    # Fully-unrolled serial recurrence.  h/c stay in vregs; the four
    # lane-aligned (1,H)@(H,H) dots all depend only on h_prev and pipeline
    # back-to-back in the MXU.
    for t in range(1, S):
        i_pre = gx_i[t:t + 1, :] + jnp.dot(h, whh_i,
                                           preferred_element_type=jnp.float32)
        f_pre = gx_f[t:t + 1, :] + jnp.dot(h, whh_f,
                                           preferred_element_type=jnp.float32)
        g_pre = gx_g[t:t + 1, :] + jnp.dot(h, whh_g,
                                           preferred_element_type=jnp.float32)
        o_pre = gx_o[t:t + 1, :] + jnp.dot(h, whh_o,
                                           preferred_element_type=jnp.float32)

        i_g = jax.nn.sigmoid(i_pre)
        f_g = jax.nn.sigmoid(f_pre)
        g_g = jnp.tanh(g_pre)
        o_g = jax.nn.sigmoid(o_pre)

        c = f_g * c + i_g * g_g
        h = o_g * jnp.tanh(c)
        hs.append(h)

    y = jnp.concatenate(hs, axis=0)                         # (S, H), in vregs

    # Final head: linear(silu(lstm_out) + x), lane-dense (S, 128-padded) out.
    z = y * jax.nn.sigmoid(y) + x
    out_ref[...] = (
        jnp.dot(z, w_lin_ref[...], preferred_element_type=jnp.float32)
        + b_lin_ref[...]
    )


@jax.jit
def lstm_forward(x, params):
    """x: (S, H) float32.  params: dict with LSTM layer-0 + linear weights."""
    S, H = x.shape
    O = params["w_lin"].shape[0]
    OP = ((O + 127) // 128) * 128          # lane-dense padded output width

    w_ih_t = params["w_ih"].T                               # (H, 4H)
    w_hh_t = params["w_hh"].T                               # (H, 4H)
    bias = (params["b_ih"] + params["b_hh"]).reshape(1, 4 * H)

    # Zero-pad the linear head to a full 128-lane output block; the padded
    # columns are exactly zero and are sliced off below (inside the same jit).
    w_lin_pad = jnp.zeros((H, OP), jnp.float32).at[:, :O].set(params["w_lin"].T)
    b_lin_pad = jnp.zeros((1, OP), jnp.float32).at[:, :O].set(
        params["b_lin"].reshape(1, O))

    kernel = functools.partial(_lstm_fused_kernel, seq_len=S, hidden=H)

    out_pad = pl.pallas_call(
        kernel,
        out_shape=jax.ShapeDtypeStruct((S, OP), jnp.float32),
        grid_spec=pltpu.PrefetchScalarGridSpec(
            num_scalar_prefetch=0,
            grid=(1,),
            in_specs=[
                pl.BlockSpec((S, H), lambda i: (0, 0)),
                pl.BlockSpec((H, 4 * H), lambda i: (0, 0)),
                pl.BlockSpec((H, 4 * H), lambda i: (0, 0)),
                pl.BlockSpec((1, 4 * H), lambda i: (0, 0)),
                pl.BlockSpec((H, OP), lambda i: (0, 0)),
                pl.BlockSpec((1, OP), lambda i: (0, 0)),
            ],
            out_specs=pl.BlockSpec((S, OP), lambda i: (0, 0)),
        ),
        compiler_params=pltpu.CompilerParams(
            dimension_semantics=("arbitrary",)),
    )(x, w_ih_t, w_hh_t, bias, w_lin_pad, b_lin_pad)

    return out_pad[:, :O]


def lstm_reference(x, params):
    """Pure-JAX reference mirroring the PyTorch forward (num_layers=1)."""
    S, H = x.shape
    w_ih, w_hh = params["w_ih"], params["w_hh"]
    b_ih, b_hh = params["b_ih"], params["b_hh"]
    h = jnp.zeros((H,), jnp.float32)
    c = jnp.zeros((H,), jnp.float32)
    ys = []
    for t in range(S):
        gates = x[t] @ w_ih.T + b_ih + h @ w_hh.T + b_hh
        i = jax.nn.sigmoid(gates[0 * H:1 * H])
        f = jax.nn.sigmoid(gates[1 * H:2 * H])
        g = jnp.tanh(gates[2 * H:3 * H])
        o = jax.nn.sigmoid(gates[3 * H:4 * H])
        c = f * c + i * g
        h = o * jnp.tanh(c)
        ys.append(h)
    y = jnp.stack(ys)
    z = jax.nn.silu(y) + x
    return z @ params["w_lin"].T + params["b_lin"]


def init_params(key, input_size, num_output):
    """Deterministic init matching the shapes of nn.LSTM(H, H) + nn.Linear(H, O)."""
    H, O = input_size, num_output
    k = 1.0 / jnp.sqrt(jnp.float32(H))
    keys = jax.random.split(key, 6)
    u = lambda kk, shape: jax.random.uniform(kk, shape, jnp.float32, -k, k)
    return {
        "w_ih": u(keys[0], (4 * H, H)),   # weight_ih_l0
        "w_hh": u(keys[1], (4 * H, H)),   # weight_hh_l0
        "b_ih": u(keys[2], (4 * H,)),     # bias_ih_l0
        "b_hh": u(keys[3], (4 * H,)),     # bias_hh_l0
        "w_lin": u(keys[4], (O, H)),      # linear.weight
        "b_lin": u(keys[5], (O,)),        # linear.bias
    }


if __name__ == "__main__":
    # TODO(synk): num_layers > 1 not implemented in-kernel; module default is 1.
    SEQ, INPUT_SIZE, NUM_OUTPUT = 8, 32, 16

    root = jax.random.PRNGKey(0)
    kx, kp = jax.random.split(root)
    x = jax.random.normal(kx, (SEQ, INPUT_SIZE), jnp.float32)
    params = init_params(kp, INPUT_SIZE, NUM_OUTPUT)

    out = lstm_forward(x, params)
    out = jax.block_until_ready(out)

    ref = lstm_reference(x, params)
    np.testing.assert_allclose(np.asarray(out), np.asarray(ref),
                               rtol=1e-5, atol=1e-5)

    print("KERNEL_OK")
</pallas_src>

<mosaic_0001>
module attributes {stable_mosaic.version = 11 : i64} {
  func.func @_lstm_fused_kernel(%arg0: i32, %arg1: memref<8x32xf32, #tpu.memory_space<vmem>>, %arg2: memref<32x128xf32, #tpu.memory_space<vmem>>, %arg3: memref<32x128xf32, #tpu.memory_space<vmem>>, %arg4: memref<1x128xf32, #tpu.memory_space<vmem>>, %arg5: memref<32x128xf32, #tpu.memory_space<vmem>>, %arg6: memref<1x128xf32, #tpu.memory_space<vmem>>, %arg7: memref<8x128xf32, #tpu.memory_space<vmem>>) attributes {dimension_semantics = [#tpu.dimension_semantics<arbitrary>], iteration_bounds = array<i64: 1>, scalar_prefetch = 0 : i64, scratch_operands = 0 : i64, tpu.core_type = #tpu.core_type<tc>, window_params = [{pipeline_mode = #tpu.pipeline_mode<synchronous>, transform_indices = @transform_0, window_bounds = array<i64: 8, 32>}, {pipeline_mode = #tpu.pipeline_mode<synchronous>, transform_indices = @transform_1, window_bounds = array<i64: 32, 128>}, {pipeline_mode = #tpu.pipeline_mode<synchronous>, transform_indices = @transform_2, window_bounds = array<i64: 32, 128>}, {pipeline_mode = #tpu.pipeline_mode<synchronous>, transform_indices = @transform_3, window_bounds = array<i64: 1, 128>}, {pipeline_mode = #tpu.pipeline_mode<synchronous>, transform_indices = @transform_4, window_bounds = array<i64: 32, 128>}, {pipeline_mode = #tpu.pipeline_mode<synchronous>, transform_indices = @transform_5, window_bounds = array<i64: 1, 128>}, {pipeline_mode = #tpu.pipeline_mode<synchronous>, transform_indices = @transform_6, window_bounds = array<i64: 8, 128>}]} {
    %c0 = arith.constant 0 : index
    %c0_0 = arith.constant 0 : index
    %0 = vector.load %arg1[%c0, %c0_0] : memref<8x32xf32, #tpu.memory_space<vmem>>, vector<8x32xf32>
    %c0_1 = arith.constant 0 : index
    %c0_2 = arith.constant 0 : index
    %1 = vector.load %arg2[%c0_1, %c0_2] : memref<32x128xf32, #tpu.memory_space<vmem>>, vector<32x128xf32>
    %cst = arith.constant dense<0.000000e+00> : vector<8x128xf32>
    %2 = tpu.matmul %0, %1, %cst {dimension_numbers = #tpu.dot_dimension_numbers<[1], [0], [0], [1], [0, 0, 1, 1], [], []>} : vector<8x32xf32>, vector<32x128xf32>, vector<8x128xf32> -> vector<8x128xf32>
    %c0_3 = arith.constant 0 : index
    %c0_4 = arith.constant 0 : index
    %3 = vector.load %arg4[%c0_3, %c0_4] : memref<1x128xf32, #tpu.memory_space<vmem>>, vector<1x128xf32>
    %4 = vector.broadcast %3 : vector<1x128xf32> to vector<8x128xf32>
    %5 = arith.addf %2, %4 : vector<8x128xf32>
    %6 = vector.extract_strided_slice %5 {offsets = [0, 0], sizes = [8, 32], strides = [1, 1]} : vector<8x128xf32> to vector<8x32xf32>
    %7 = vector.extract_strided_slice %5 {offsets = [0, 32], sizes = [8, 32], strides = [1, 1]} : vector<8x128xf32> to vector<8x32xf32>
    %8 = vector.extract_strided_slice %5 {offsets = [0, 64], sizes = [8, 32], strides = [1, 1]} : vector<8x128xf32> to vector<8x32xf32>
    %9 = vector.extract_strided_slice %5 {offsets = [0, 96], sizes = [8, 32], strides = [1, 1]} : vector<8x128xf32> to vector<8x32xf32>
    %c0_5 = arith.constant 0 : index
    %c0_6 = arith.constant 0 : index
    %10 = vector.load %arg3[%c0_5, %c0_6] : memref<32x128xf32, #tpu.memory_space<vmem>>, vector<32x128xf32>
    %11 = vector.extract_strided_slice %10 {offsets = [0, 0], sizes = [32, 32], strides = [1, 1]} : vector<32x128xf32> to vector<32x32xf32>
    %12 = vector.extract_strided_slice %10 {offsets = [0, 32], sizes = [32, 32], strides = [1, 1]} : vector<32x128xf32> to vector<32x32xf32>
    %13 = vector.extract_strided_slice %10 {offsets = [0, 64], sizes = [32, 32], strides = [1, 1]} : vector<32x128xf32> to vector<32x32xf32>
    %14 = vector.extract_strided_slice %10 {offsets = [0, 96], sizes = [32, 32], strides = [1, 1]} : vector<32x128xf32> to vector<32x32xf32>
    %15 = vector.extract_strided_slice %6 {offsets = [0, 0], sizes = [1, 32], strides = [1, 1]} : vector<8x32xf32> to vector<1x32xf32>
    %16 = arith.negf %15 : vector<1x32xf32>
    %17 = math.exp %16 : vector<1x32xf32>
    %cst_7 = arith.constant 1.000000e+00 : f32
    %18 = vector.broadcast %cst_7 : f32 to vector<1x32xf32>
    %19 = arith.addf %18, %17 : vector<1x32xf32>
    %20 = arith.divf %18, %19 : vector<1x32xf32>
    %21 = vector.extract_strided_slice %8 {offsets = [0, 0], sizes = [1, 32], strides = [1, 1]} : vector<8x32xf32> to vector<1x32xf32>
    %22 = math.tanh %21 : vector<1x32xf32>
    %23 = vector.extract_strided_slice %9 {offsets = [0, 0], sizes = [1, 32], strides = [1, 1]} : vector<8x32xf32> to vector<1x32xf32>
    %24 = arith.negf %23 : vector<1x32xf32>
    %25 = math.exp %24 : vector<1x32xf32>
    %cst_8 = arith.constant 1.000000e+00 : f32
    %26 = vector.broadcast %cst_8 : f32 to vector<1x32xf32>
    %27 = arith.addf %26, %25 : vector<1x32xf32>
    %28 = arith.divf %26, %27 : vector<1x32xf32>
    %29 = arith.mulf %20, %22 : vector<1x32xf32>
    %30 = math.tanh %29 : vector<1x32xf32>
    %31 = arith.mulf %28, %30 : vector<1x32xf32>
    %32 = vector.extract_strided_slice %6 {offsets = [1, 0], sizes = [1, 32], strides = [1, 1]} : vector<8x32xf32> to vector<1x32xf32>
    %cst_9 = arith.constant dense<0.000000e+00> : vector<1x32xf32>
    %33 = tpu.matmul %31, %11, %cst_9 {dimension_numbers = #tpu.dot_dimension_numbers<[1], [0], [0], [1], [0, 0, 1, 1], [], []>} : vector<1x32xf32>, vector<32x32xf32>, vector<1x32xf32> -> vector<1x32xf32>
    %34 = arith.addf %32, %33 : vector<1x32xf32>
    %35 = vector.extract_strided_slice %7 {offsets = [1, 0], sizes = [1, 32], strides = [1, 1]} : vector<8x32xf32> to vector<1x32xf32>
    %cst_10 = arith.constant dense<0.000000e+00> : vector<1x32xf32>
    %36 = tpu.matmul %31, %12, %cst_10 {dimension_numbers = #tpu.dot_dimension_numbers<[1], [0], [0], [1], [0, 0, 1, 1], [], []>} : vector<1x32xf32>, vector<32x32xf32>, vector<1x32xf32> -> vector<1x32xf32>
    %37 = arith.addf %35, %36 : vector<1x32xf32>
    %38 = vector.extract_strided_slice %8 {offsets = [1, 0], sizes = [1, 32], strides = [1, 1]} : vector<8x32xf32> to vector<1x32xf32>
    %cst_11 = arith.constant dense<0.000000e+00> : vector<1x32xf32>
    %39 = tpu.matmul %31, %13, %cst_11 {dimension_numbers = #tpu.dot_dimension_numbers<[1], [0], [0], [1], [0, 0, 1, 1], [], []>} : vector<1x32xf32>, vector<32x32xf32>, vector<1x32xf32> -> vector<1x32xf32>
    %40 = arith.addf %38, %39 : vector<1x32xf32>
    %41 = vector.extract_strided_slice %9 {offsets = [1, 0], sizes = [1, 32], strides = [1, 1]} : vector<8x32xf32> to vector<1x32xf32>
    %cst_12 = arith.constant dense<0.000000e+00> : vector<1x32xf32>
    %42 = tpu.matmul %31, %14, %cst_12 {dimension_numbers = #tpu.dot_dimension_numbers<[1], [0], [0], [1], [0, 0, 1, 1], [], []>} : vector<1x32xf32>, vector<32x32xf32>, vector<1x32xf32> -> vector<1x32xf32>
    %43 = arith.addf %41, %42 : vector<1x32xf32>
    %44 = arith.negf %34 : vector<1x32xf32>
    %45 = math.exp %44 : vector<1x32xf32>
    %cst_13 = arith.constant 1.000000e+00 : f32
    %46 = vector.broadcast %cst_13 : f32 to vector<1x32xf32>
    %47 = arith.addf %46, %45 : vector<1x32xf32>
    %48 = arith.divf %46, %47 : vector<1x32xf32>
    %49 = arith.negf %37 : vector<1x32xf32>
    %50 = math.exp %49 : vector<1x32xf32>
    %cst_14 = arith.constant 1.000000e+00 : f32
    %51 = vector.broadcast %cst_14 : f32 to vector<1x32xf32>
    %52 = arith.addf %51, %50 : vector<1x32xf32>
    %53 = arith.divf %51, %52 : vector<1x32xf32>
    %54 = math.tanh %40 : vector<1x32xf32>
    %55 = arith.negf %43 : vector<1x32xf32>
    %56 = math.exp %55 : vector<1x32xf32>
    %cst_15 = arith.constant 1.000000e+00 : f32
    %57 = vector.broadcast %cst_15 : f32 to vector<1x32xf32>
    %58 = arith.addf %57, %56 : vector<1x32xf32>
    %59 = arith.divf %57, %58 : vector<1x32xf32>
    %60 = arith.mulf %53, %29 : vector<1x32xf32>
    %61 = arith.mulf %48, %54 : vector<1x32xf32>
    %62 = arith.addf %60, %61 : vector<1x32xf32>
    %63 = math.tanh %62 : vector<1x32xf32>
    %64 = arith.mulf %59, %63 : vector<1x32xf32>
    %65 = vector.extract_strided_slice %6 {offsets = [2, 0], sizes = [1, 32], strides = [1, 1]} : vector<8x32xf32> to vector<1x32xf32>
    %cst_16 = arith.constant dense<0.000000e+00> : vector<1x32xf32>
    %66 = tpu.matmul %64, %11, %cst_16 {dimension_numbers = #tpu.dot_dimension_numbers<[1], [0], [0], [1], [0, 0, 1, 1], [], []>} : vector<1x32xf32>, vector<32x32xf32>, vector<1x32xf32> -> vector<1x32xf32>
    %67 = arith.addf %65, %66 : vector<1x32xf32>
    %68 = vector.extract_strided_slice %7 {offsets = [2, 0], sizes = [1, 32], strides = [1, 1]} : vector<8x32xf32> to vector<1x32xf32>
    %cst_17 = arith.constant dense<0.000000e+00> : vector<1x32xf32>
    %69 = tpu.matmul %64, %12, %cst_17 {dimension_numbers = #tpu.dot_dimension_numbers<[1], [0], [0], [1], [0, 0, 1, 1], [], []>} : vector<1x32xf32>, vector<32x32xf32>, vector<1x32xf32> -> vector<1x32xf32>
    %70 = arith.addf %68, %69 : vector<1x32xf32>
    %71 = vector.extract_strided_slice %8 {offsets = [2, 0], sizes = [1, 32], strides = [1, 1]} : vector<8x32xf32> to vector<1x32xf32>
    %cst_18 = arith.constant dense<0.000000e+00> : vector<1x32xf32>
    %72 = tpu.matmul %64, %13, %cst_18 {dimension_numbers = #tpu.dot_dimension_numbers<[1], [0], [0], [1], [0, 0, 1, 1], [], []>} : vector<1x32xf32>, vector<32x32xf32>, vector<1x32xf32> -> vector<1x32xf32>
    %73 = arith.addf %71, %72 : vector<1x32xf32>
    %74 = vector.extract_strided_slice %9 {offsets = [2, 0], sizes = [1, 32], strides = [1, 1]} : vector<8x32xf32> to vector<1x32xf32>
    %cst_19 = arith.constant dense<0.000000e+00> : vector<1x32xf32>
    %75 = tpu.matmul %64, %14, %cst_19 {dimension_numbers = #tpu.dot_dimension_numbers<[1], [0], [0], [1], [0, 0, 1, 1], [], []>} : vector<1x32xf32>, vector<32x32xf32>, vector<1x32xf32> -> vector<1x32xf32>
    %76 = arith.addf %74, %75 : vector<1x32xf32>
    %77 = arith.negf %67 : vector<1x32xf32>
    %78 = math.exp %77 : vector<1x32xf32>
    %cst_20 = arith.constant 1.000000e+00 : f32
    %79 = vector.broadcast %cst_20 : f32 to vector<1x32xf32>
    %80 = arith.addf %79, %78 : vector<1x32xf32>
    %81 = arith.divf %79, %80 : vector<1x32xf32>
    %82 = arith.negf %70 : vector<1x32xf32>
    %83 = math.exp %82 : vector<1x32xf32>
    %cst_21 = arith.constant 1.000000e+00 : f32
    %84 = vector.broadcast %cst_21 : f32 to vector<1x32xf32>
    %85 = arith.addf %84, %83 : vector<1x32xf32>
    %86 = arith.divf %84, %85 : vector<1x32xf32>
    %87 = math.tanh %73 : vector<1x32xf32>
    %88 = arith.negf %76 : vector<1x32xf32>
    %89 = math.exp %88 : vector<1x32xf32>
    %cst_22 = arith.constant 1.000000e+00 : f32
    %90 = vector.broadcast %cst_22 : f32 to vector<1x32xf32>
    %91 = arith.addf %90, %89 : vector<1x32xf32>
    %92 = arith.divf %90, %91 : vector<1x32xf32>
    %93 = arith.mulf %86, %62 : vector<1x32xf32>
    %94 = arith.mulf %81, %87 : vector<1x32xf32>
    %95 = arith.addf %93, %94 : vector<1x32xf32>
    %96 = math.tanh %95 : vector<1x32xf32>
    %97 = arith.mulf %92, %96 : vector<1x32xf32>
    %98 = vector.extract_strided_slice %6 {offsets = [3, 0], sizes = [1, 32], strides = [1, 1]} : vector<8x32xf32> to vector<1x32xf32>
    %cst_23 = arith.constant dense<0.000000e+00> : vector<1x32xf32>
    %99 = tpu.matmul %97, %11, %cst_23 {dimension_numbers = #tpu.dot_dimension_numbers<[1], [0], [0], [1], [0, 0, 1, 1], [], []>} : vector<1x32xf32>, vector<32x32xf32>, vector<1x32xf32> -> vector<1x32xf32>
    %100 = arith.addf %98, %99 : vector<1x32xf32>
    %101 = vector.extract_strided_slice %7 {offsets = [3, 0], sizes = [1, 32], strides = [1, 1]} : vector<8x32xf32> to vector<1x32xf32>
    %cst_24 = arith.constant dense<0.000000e+00> : vector<1x32xf32>
    %102 = tpu.matmul %97, %12, %cst_24 {dimension_numbers = #tpu.dot_dimension_numbers<[1], [0], [0], [1], [0, 0, 1, 1], [], []>} : vector<1x32xf32>, vector<32x32xf32>, vector<1x32xf32> -> vector<1x32xf32>
    %103 = arith.addf %101, %102 : vector<1x32xf32>
    %104 = vector.extract_strided_slice %8 {offsets = [3, 0], sizes = [1, 32], strides = [1, 1]} : vector<8x32xf32> to vector<1x32xf32>
    %cst_25 = arith.constant dense<0.000000e+00> : vector<1x32xf32>
    %105 = tpu.matmul %97, %13, %cst_25 {dimension_numbers = #tpu.dot_dimension_numbers<[1], [0], [0], [1], [0, 0, 1, 1], [], []>} : vector<1x32xf32>, vector<32x32xf32>, vector<1x32xf32> -> vector<1x32xf32>
    %106 = arith.addf %104, %105 : vector<1x32xf32>
    %107 = vector.extract_strided_slice %9 {offsets = [3, 0], sizes = [1, 32], strides = [1, 1]} : vector<8x32xf32> to vector<1x32xf32>
    %cst_26 = arith.constant dense<0.000000e+00> : vector<1x32xf32>
    %108 = tpu.matmul %97, %14, %cst_26 {dimension_numbers = #tpu.dot_dimension_numbers<[1], [0], [0], [1], [0, 0, 1, 1], [], []>} : vector<1x32xf32>, vector<32x32xf32>, vector<1x32xf32> -> vector<1x32xf32>
    %109 = arith.addf %107, %108 : vector<1x32xf32>
    %110 = arith.negf %100 : vector<1x32xf32>
    %111 = math.exp %110 : vector<1x32xf32>
    %cst_27 = arith.constant 1.000000e+00 : f32
    %112 = vector.broadcast %cst_27 : f32 to vector<1x32xf32>
    %113 = arith.addf %112, %111 : vector<1x32xf32>
    %114 = arith.divf %112, %113 : vector<1x32xf32>
    %115 = arith.negf %103 : vector<1x32xf32>
    %116 = math.exp %115 : vector<1x32xf32>
    %cst_28 = arith.constant 1.000000e+00 : f32
    %117 = vector.broadcast %cst_28 : f32 to vector<1x32xf32>
    %118 = arith.addf %117, %116 : vector<1x32xf32>
    %119 = arith.divf %117, %118 : vector<1x32xf32>
    %120 = math.tanh %106 : vector<1x32xf32>
    %121 = arith.negf %109 : vector<1x32xf32>
    %122 = math.exp %121 : vector<1x32xf32>
    %cst_29 = arith.constant 1.000000e+00 : f32
    %123 = vector.broadcast %cst_29 : f32 to vector<1x32xf32>
    %124 = arith.addf %123, %122 : vector<1x32xf32>
    %125 = arith.divf %123, %124 : vector<1x32xf32>
    %126 = arith.mulf %119, %95 : vector<1x32xf32>
    %127 = arith.mulf %114, %120 : vector<1x32xf32>
    %128 = arith.addf %126, %127 : vector<1x32xf32>
    %129 = math.tanh %128 : vector<1x32xf32>
    %130 = arith.mulf %125, %129 : vector<1x32xf32>
    %131 = vector.extract_strided_slice %6 {offsets = [4, 0], sizes = [1, 32], strides = [1, 1]} : vector<8x32xf32> to vector<1x32xf32>
    %cst_30 = arith.constant dense<0.000000e+00> : vector<1x32xf32>
    %132 = tpu.matmul %130, %11, %cst_30 {dimension_numbers = #tpu.dot_dimension_numbers<[1], [0], [0], [1], [0, 0, 1, 1], [], []>} : vector<1x32xf32>, vector<32x32xf32>, vector<1x32xf32> -> vector<1x32xf32>
    %133 = arith.addf %131, %132 : vector<1x32xf32>
    %134 = vector.extract_strided_slice %7 {offsets = [4, 0], sizes = [1, 32], strides = [1, 1]} : vector<8x32xf32> to vector<1x32xf32>
    %cst_31 = arith.constant dense<0.000000e+00> : vector<1x32xf32>
    %135 = tpu.matmul %130, %12, %cst_31 {dimension_numbers = #tpu.dot_dimension_numbers<[1], [0], [0], [1], [0, 0, 1, 1], [], []>} : vector<1x32xf32>, vector<32x32xf32>, vector<1x32xf32> -> vector<1x32xf32>
    %136 = arith.addf %134, %135 : vector<1x32xf32>
    %137 = vector.extract_strided_slice %8 {offsets = [4, 0], sizes = [1, 32], strides = [1, 1]} : vector<8x32xf32> to vector<1x32xf32>
    %cst_32 = arith.constant dense<0.000000e+00> : vector<1x32xf32>
    %138 = tpu.matmul %130, %13, %cst_32 {dimension_numbers = #tpu.dot_dimension_numbers<[1], [0], [0], [1], [0, 0, 1, 1], [], []>} : vector<1x32xf32>, vector<32x32xf32>, vector<1x32xf32> -> vector<1x32xf32>
    %139 = arith.addf %137, %138 : vector<1x32xf32>
    %140 = vector.extract_strided_slice %9 {offsets = [4, 0], sizes = [1, 32], strides = [1, 1]} : vector<8x32xf32> to vector<1x32xf32>
    %cst_33 = arith.constant dense<0.000000e+00> : vector<1x32xf32>
    %141 = tpu.matmul %130, %14, %cst_33 {dimension_numbers = #tpu.dot_dimension_numbers<[1], [0], [0], [1], [0, 0, 1, 1], [], []>} : vector<1x32xf32>, vector<32x32xf32>, vector<1x32xf32> -> vector<1x32xf32>
    %142 = arith.addf %140, %141 : vector<1x32xf32>
    %143 = arith.negf %133 : vector<1x32xf32>
    %144 = math.exp %143 : vector<1x32xf32>
    %cst_34 = arith.constant 1.000000e+00 : f32
    %145 = vector.broadcast %cst_34 : f32 to vector<1x32xf32>
    %146 = arith.addf %145, %144 : vector<1x32xf32>
    %147 = arith.divf %145, %146 : vector<1x32xf32>
    %148 = arith.negf %136 : vector<1x32xf32>
    %149 = math.exp %148 : vector<1x32xf32>
    %cst_35 = arith.constant 1.000000e+00 : f32
    %150 = vector.broadcast %cst_35 : f32 to vector<1x32xf32>
    %151 = arith.addf %150, %149 : vector<1x32xf32>
    %152 = arith.divf %150, %151 : vector<1x32xf32>
    %153 = math.tanh %139 : vector<1x32xf32>
    %154 = arith.negf %142 : vector<1x32xf32>
    %155 = math.exp %154 : vector<1x32xf32>
    %cst_36 = arith.constant 1.000000e+00 : f32
    %156 = vector.broadcast %cst_36 : f32 to vector<1x32xf32>
    %157 = arith.addf %156, %155 : vector<1x32xf32>
    %158 = arith.divf %156, %157 : vector<1x32xf32>
    %159 = arith.mulf %152, %128 : vector<1x32xf32>
    %160 = arith.mulf %147, %153 : vector<1x32xf32>
    %161 = arith.addf %159, %160 : vector<1x32xf32>
    %162 = math.tanh %161 : vector<1x32xf32>
    %163 = arith.mulf %158, %162 : vector<1x32xf32>
    %164 = vector.extract_strided_slice %6 {offsets = [5, 0], sizes = [1, 32], strides = [1, 1]} : vector<8x32xf32> to vector<1x32xf32>
    %cst_37 = arith.constant dense<0.000000e+00> : vector<1x32xf32>
    %165 = tpu.matmul %163, %11, %cst_37 {dimension_numbers = #tpu.dot_dimension_numbers<[1], [0], [0], [1], [0, 0, 1, 1], [], []>} : vector<1x32xf32>, vector<32x32xf32>, vector<1x32xf32> -> vector<1x32xf32>
    %166 = arith.addf %164, %165 : vector<1x32xf32>
    %167 = vector.extract_strided_slice %7 {offsets = [5, 0], sizes = [1, 32], strides = [1, 1]} : vector<8x32xf32> to vector<1x32xf32>
    %cst_38 = arith.constant dense<0.000000e+00> : vector<1x32xf32>
    %168 = tpu.matmul %163, %12, %cst_38 {dimension_numbers = #tpu.dot_dimension_numbers<[1], [0], [0], [1], [0, 0, 1, 1], [], []>} : vector<1x32xf32>, vector<32x32xf32>, vector<1x32xf32> -> vector<1x32xf32>
    %169 = arith.addf %167, %168 : vector<1x32xf32>
    %170 = vector.extract_strided_slice %8 {offsets = [5, 0], sizes = [1, 32], strides = [1, 1]} : vector<8x32xf32> to vector<1x32xf32>
    %cst_39 = arith.constant dense<0.000000e+00> : vector<1x32xf32>
    %171 = tpu.matmul %163, %13, %cst_39 {dimension_numbers = #tpu.dot_dimension_numbers<[1], [0], [0], [1], [0, 0, 1, 1], [], []>} : vector<1x32xf32>, vector<32x32xf32>, vector<1x32xf32> -> vector<1x32xf32>
    %172 = arith.addf %170, %171 : vector<1x32xf32>
    %173 = vector.extract_strided_slice %9 {offsets = [5, 0], sizes = [1, 32], strides = [1, 1]} : vector<8x32xf32> to vector<1x32xf32>
    %cst_40 = arith.constant dense<0.000000e+00> : vector<1x32xf32>
    %174 = tpu.matmul %163, %14, %cst_40 {dimension_numbers = #tpu.dot_dimension_numbers<[1], [0], [0], [1], [0, 0, 1, 1], [], []>} : vector<1x32xf32>, vector<32x32xf32>, vector<1x32xf32> -> vector<1x32xf32>
    %175 = arith.addf %173, %174 : vector<1x32xf32>
    %176 = arith.negf %166 : vector<1x32xf32>
    %177 = math.exp %176 : vector<1x32xf32>
    %cst_41 = arith.constant 1.000000e+00 : f32
    %178 = vector.broadcast %cst_41 : f32 to vector<1x32xf32>
    %179 = arith.addf %178, %177 : vector<1x32xf32>
    %180 = arith.divf %178, %179 : vector<1x32xf32>
    %181 = arith.negf %169 : vector<1x32xf32>
    %182 = math.exp %181 : vector<1x32xf32>
    %cst_42 = arith.constant 1.000000e+00 : f32
    %183 = vector.broadcast %cst_42 : f32 to vector<1x32xf32>
    %184 = arith.addf %183, %182 : vector<1x32xf32>
    %185 = arith.divf %183, %184 : vector<1x32xf32>
    %186 = math.tanh %172 : vector<1x32xf32>
    %187 = arith.negf %175 : vector<1x32xf32>
    %188 = math.exp %187 : vector<1x32xf32>
    %cst_43 = arith.constant 1.000000e+00 : f32
    %189 = vector.broadcast %cst_43 : f32 to vector<1x32xf32>
    %190 = arith.addf %189, %188 : vector<1x32xf32>
    %191 = arith.divf %189, %190 : vector<1x32xf32>
    %192 = arith.mulf %185, %161 : vector<1x32xf32>
    %193 = arith.mulf %180, %186 : vector<1x32xf32>
    %194 = arith.addf %192, %193 : vector<1x32xf32>
    %195 = math.tanh %194 : vector<1x32xf32>
    %196 = arith.mulf %191, %195 : vector<1x32xf32>
    %197 = vector.extract_strided_slice %6 {offsets = [6, 0], sizes = [1, 32], strides = [1, 1]} : vector<8x32xf32> to vector<1x32xf32>
    %cst_44 = arith.constant dense<0.000000e+00> : vector<1x32xf32>
    %198 = tpu.matmul %196, %11, %cst_44 {dimension_numbers = #tpu.dot_dimension_numbers<[1], [0], [0], [1], [0, 0, 1, 1], [], []>} : vector<1x32xf32>, vector<32x32xf32>, vector<1x32xf32> -> vector<1x32xf32>
    %199 = arith.addf %197, %198 : vector<1x32xf32>
    %200 = vector.extract_strided_slice %7 {offsets = [6, 0], sizes = [1, 32], strides = [1, 1]} : vector<8x32xf32> to vector<1x32xf32>
    %cst_45 = arith.constant dense<0.000000e+00> : vector<1x32xf32>
    %201 = tpu.matmul %196, %12, %cst_45 {dimension_numbers = #tpu.dot_dimension_numbers<[1], [0], [0], [1], [0, 0, 1, 1], [], []>} : vector<1x32xf32>, vector<32x32xf32>, vector<1x32xf32> -> vector<1x32xf32>
    %202 = arith.addf %200, %201 : vector<1x32xf32>
    %203 = vector.extract_strided_slice %8 {offsets = [6, 0], sizes = [1, 32], strides = [1, 1]} : vector<8x32xf32> to vector<1x32xf32>
    %cst_46 = arith.constant dense<0.000000e+00> : vector<1x32xf32>
    %204 = tpu.matmul %196, %13, %cst_46 {dimension_numbers = #tpu.dot_dimension_numbers<[1], [0], [0], [1], [0, 0, 1, 1], [], []>} : vector<1x32xf32>, vector<32x32xf32>, vector<1x32xf32> -> vector<1x32xf32>
    %205 = arith.addf %203, %204 : vector<1x32xf32>
    %206 = vector.extract_strided_slice %9 {offsets = [6, 0], sizes = [1, 32], strides = [1, 1]} : vector<8x32xf32> to vector<1x32xf32>
    %cst_47 = arith.constant dense<0.000000e+00> : vector<1x32xf32>
    %207 = tpu.matmul %196, %14, %cst_47 {dimension_numbers = #tpu.dot_dimension_numbers<[1], [0], [0], [1], [0, 0, 1, 1], [], []>} : vector<1x32xf32>, vector<32x32xf32>, vector<1x32xf32> -> vector<1x32xf32>
    %208 = arith.addf %206, %207 : vector<1x32xf32>
    %209 = arith.negf %199 : vector<1x32xf32>
    %210 = math.exp %209 : vector<1x32xf32>
    %cst_48 = arith.constant 1.000000e+00 : f32
    %211 = vector.broadcast %cst_48 : f32 to vector<1x32xf32>
    %212 = arith.addf %211, %210 : vector<1x32xf32>
    %213 = arith.divf %211, %212 : vector<1x32xf32>
    %214 = arith.negf %202 : vector<1x32xf32>
    %215 = math.exp %214 : vector<1x32xf32>
    %cst_49 = arith.constant 1.000000e+00 : f32
    %216 = vector.broadcast %cst_49 : f32 to vector<1x32xf32>
    %217 = arith.addf %216, %215 : vector<1x32xf32>
    %218 = arith.divf %216, %217 : vector<1x32xf32>
    %219 = math.tanh %205 : vector<1x32xf32>
    %220 = arith.negf %208 : vector<1x32xf32>
    %221 = math.exp %220 : vector<1x32xf32>
    %cst_50 = arith.constant 1.000000e+00 : f32
    %222 = vector.broadcast %cst_50 : f32 to vector<1x32xf32>
    %223 = arith.addf %222, %221 : vector<1x32xf32>
    %224 = arith.divf %222, %223 : vector<1x32xf32>
    %225 = arith.mulf %218, %194 : vector<1x32xf32>
    %226 = arith.mulf %213, %219 : vector<1x32xf32>
    %227 = arith.addf %225, %226 : vector<1x32xf32>
    %228 = math.tanh %227 : vector<1x32xf32>
    %229 = arith.mulf %224, %228 : vector<1x32xf32>
    %230 = vector.extract_strided_slice %6 {offsets = [7, 0], sizes = [1, 32], strides = [1, 1]} : vector<8x32xf32> to vector<1x32xf32>
    %cst_51 = arith.constant dense<0.000000e+00> : vector<1x32xf32>
    %231 = tpu.matmul %229, %11, %cst_51 {dimension_numbers = #tpu.dot_dimension_numbers<[1], [0], [0], [1], [0, 0, 1, 1], [], []>} : vector<1x32xf32>, vector<32x32xf32>, vector<1x32xf32> -> vector<1x32xf32>
    %232 = arith.addf %230, %231 : vector<1x32xf32>
    %233 = vector.extract_strided_slice %7 {offsets = [7, 0], sizes = [1, 32], strides = [1, 1]} : vector<8x32xf32> to vector<1x32xf32>
    %cst_52 = arith.constant dense<0.000000e+00> : vector<1x32xf32>
    %234 = tpu.matmul %229, %12, %cst_52 {dimension_numbers = #tpu.dot_dimension_numbers<[1], [0], [0], [1], [0, 0, 1, 1], [], []>} : vector<1x32xf32>, vector<32x32xf32>, vector<1x32xf32> -> vector<1x32xf32>
    %235 = arith.addf %233, %234 : vector<1x32xf32>
    %236 = vector.extract_strided_slice %8 {offsets = [7, 0], sizes = [1, 32], strides = [1, 1]} : vector<8x32xf32> to vector<1x32xf32>
    %cst_53 = arith.constant dense<0.000000e+00> : vector<1x32xf32>
    %237 = tpu.matmul %229, %13, %cst_53 {dimension_numbers = #tpu.dot_dimension_numbers<[1], [0], [0], [1], [0, 0, 1, 1], [], []>} : vector<1x32xf32>, vector<32x32xf32>, vector<1x32xf32> -> vector<1x32xf32>
    %238 = arith.addf %236, %237 : vector<1x32xf32>
    %239 = vector.extract_strided_slice %9 {offsets = [7, 0], sizes = [1, 32], strides = [1, 1]} : vector<8x32xf32> to vector<1x32xf32>
    %cst_54 = arith.constant dense<0.000000e+00> : vector<1x32xf32>
    %240 = tpu.matmul %229, %14, %cst_54 {dimension_numbers = #tpu.dot_dimension_numbers<[1], [0], [0], [1], [0, 0, 1, 1], [], []>} : vector<1x32xf32>, vector<32x32xf32>, vector<1x32xf32> -> vector<1x32xf32>
    %241 = arith.addf %239, %240 : vector<1x32xf32>
    %242 = arith.negf %232 : vector<1x32xf32>
    %243 = math.exp %242 : vector<1x32xf32>
    %cst_55 = arith.constant 1.000000e+00 : f32
    %244 = vector.broadcast %cst_55 : f32 to vector<1x32xf32>
    %245 = arith.addf %244, %243 : vector<1x32xf32>
    %246 = arith.divf %244, %245 : vector<1x32xf32>
    %247 = arith.negf %235 : vector<1x32xf32>
    %248 = math.exp %247 : vector<1x32xf32>
    %cst_56 = arith.constant 1.000000e+00 : f32
    %249 = vector.broadcast %cst_56 : f32 to vector<1x32xf32>
    %250 = arith.addf %249, %248 : vector<1x32xf32>
    %251 = arith.divf %249, %250 : vector<1x32xf32>
    %252 = math.tanh %238 : vector<1x32xf32>
    %253 = arith.negf %241 : vector<1x32xf32>
    %254 = math.exp %253 : vector<1x32xf32>
    %cst_57 = arith.constant 1.000000e+00 : f32
    %255 = vector.broadcast %cst_57 : f32 to vector<1x32xf32>
    %256 = arith.addf %255, %254 : vector<1x32xf32>
    %257 = arith.divf %255, %256 : vector<1x32xf32>
    %258 = arith.mulf %251, %227 : vector<1x32xf32>
    %259 = arith.mulf %246, %252 : vector<1x32xf32>
    %260 = arith.addf %258, %259 : vector<1x32xf32>
    %261 = math.tanh %260 : vector<1x32xf32>
    %262 = arith.mulf %257, %261 : vector<1x32xf32>
    %263 = tpu.concatenate %31, %64, %97, %130, %163, %196, %229, %262 in 0 : vector<1x32xf32>, vector<1x32xf32>, vector<1x32xf32>, vector<1x32xf32>, vector<1x32xf32>, vector<1x32xf32>, vector<1x32xf32>, vector<1x32xf32> -> vector<8x32xf32>
    %264 = arith.negf %263 : vector<8x32xf32>
    %265 = math.exp %264 : vector<8x32xf32>
    %cst_58 = arith.constant 1.000000e+00 : f32
    %266 = vector.broadcast %cst_58 : f32 to vector<8x32xf32>
    %267 = arith.addf %266, %265 : vector<8x32xf32>
    %268 = arith.divf %266, %267 : vector<8x32xf32>
    %269 = arith.mulf %263, %268 : vector<8x32xf32>
    %270 = arith.addf %269, %0 : vector<8x32xf32>
    %c0_59 = arith.constant 0 : index
    %c0_60 = arith.constant 0 : index
    %271 = vector.load %arg5[%c0_59, %c0_60] : memref<32x128xf32, #tpu.memory_space<vmem>>, vector<32x128xf32>
    %cst_61 = arith.constant dense<0.000000e+00> : vector<8x128xf32>
    %272 = tpu.matmul %270, %271, %cst_61 {dimension_numbers = #tpu.dot_dimension_numbers<[1], [0], [0], [1], [0, 0, 1, 1], [], []>} : vector<8x32xf32>, vector<32x128xf32>, vector<8x128xf32> -> vector<8x128xf32>
    %c0_62 = arith.constant 0 : index
    %c0_63 = arith.constant 0 : index
    %273 = vector.load %arg6[%c0_62, %c0_63] : memref<1x128xf32, #tpu.memory_space<vmem>>, vector<1x128xf32>
    %274 = vector.broadcast %273 : vector<1x128xf32> to vector<8x128xf32>
    %275 = arith.addf %272, %274 : vector<8x128xf32>
    %c0_64 = arith.constant 0 : index
    %c0_65 = arith.constant 0 : index
    %276 = vector.load %arg7[%c0_64, %c0_65] : memref<8x128xf32, #tpu.memory_space<vmem>>, vector<8x128xf32>
    tpu.vector_store %arg7[%c0_64, %c0_65], %275 {strides = array<i32>} : memref<8x128xf32, #tpu.memory_space<vmem>>, vector<8x128xf32>,
    return
  }
  func.func @transform_0(%arg0: i32) -> (i32, i32) {
    %c0_i32 = arith.constant 0 : i32
    %c0_i32_0 = arith.constant 0 : i32
    %c0_i32_1 = arith.constant 0 : i32
    return %c0_i32, %c0_i32_0 : i32, i32
  }
  func.func @transform_1(%arg0: i32) -> (i32, i32) {
    %c0_i32 = arith.constant 0 : i32
    %c0_i32_0 = arith.constant 0 : i32
    %c0_i32_1 = arith.constant 0 : i32
    return %c0_i32, %c0_i32_0 : i32, i32
  }
  func.func @transform_2(%arg0: i32) -> (i32, i32) {
    %c0_i32 = arith.constant 0 : i32
    %c0_i32_0 = arith.constant 0 : i32
    %c0_i32_1 = arith.constant 0 : i32
    return %c0_i32, %c0_i32_0 : i32, i32
  }
  func.func @transform_3(%arg0: i32) -> (i32, i32) {
    %c0_i32 = arith.constant 0 : i32
    %c0_i32_0 = arith.constant 0 : i32
    %c0_i32_1 = arith.constant 0 : i32
    return %c0_i32, %c0_i32_0 : i32, i32
  }
  func.func @transform_4(%arg0: i32) -> (i32, i32) {
    %c0_i32 = arith.constant 0 : i32
    %c0_i32_0 = arith.constant 0 : i32
    %c0_i32_1 = arith.constant 0 : i32
    return %c0_i32, %c0_i32_0 : i32, i32
  }
  func.func @transform_5(%arg0: i32) -> (i32, i32) {
    %c0_i32 = arith.constant 0 : i32
    %c0_i32_0 = arith.constant 0 : i32
    %c0_i32_1 = arith.constant 0 : i32
    return %c0_i32, %c0_i32_0 : i32, i32
  }
  func.func @transform_6(%arg0: i32) -> (i32, i32) {
    %c0_i32 = arith.constant 0 : i32
    %c0_i32_0 = arith.constant 0 : i32
    %c0_i32_1 = arith.constant 0 : i32
    return %c0_i32, %c0_i32_0 : i32, i32
  }
}

</mosaic_0001>

<bundles_post_ra>
// kernel: lstm_forward.1
= control target key start
LH: loop header
LB: loop body
LE: loop exit
PB: predicated region body
PF: predicated region fallthrough
CT: control target
= control target key end

     0   :  { %v3629_v3 = vmov 0.0|0.0   ;;  %vm3630_vm0 = vmmov 0   ;;  %v3631_v6 = vmov 0.0   ;;  %s4096_s0 = inlined_call_operand.vmem [shape: f32[8,32], index: 0, kind: input, shape index: {}]   ;;  %s4097_s1 = inlined_call_operand.vmem [shape: f32[32,128], index: 1, kind: input, shape index: {}]   ;;  %s4098_s2 = inlined_call_operand.vmem [shape: f32[32,128], index: 2, kind: input, shape index: {}]   ;;  %s4099_s3 = inlined_call_operand.vmem [shape: f32[1,128], index: 3, kind: input, shape index: {}]   ;;  %s4100_s4 = inlined_call_operand.vmem [shape: f32[32,128], index: 4, kind: input, shape index: {}]   ;;  %s4101_s5 = inlined_call_operand.vmem [shape: f32[1,128], index: 5, kind: input, shape index: {}]   ;;  %s4102_s6 = inlined_call_operand.hbm [shape: f32[8,128], index: 6, kind: output, shape index: {}]  }
   0x1   :  { %v25_v0 = vld [vmem:[%s4097_s1] sm:$0xff]  ;;  %v26_v1 = vld [vmem:[%s4097_s1 + $0x8] sm:$0xff]  ;;  %v27_v2 = vld [vmem:[%s4097_s1 + $0x10] sm:$0xff]  ;;  %3263 = vmatprep.subr.bf16.mxu0 %v3629_v3  ;;  %2941 = vmatprep.mubr.msk.f32.mxu0 %vm3630_vm0, %v3631_v6 }
   0x2   :  { %v3264_v4 = vpack.c.bf16 %v26_v1, %v25_v0  ;;  %v28_v5 = vld [vmem:[%s4097_s1 + $0x18] sm:$0xff]  ;;  %3269 = vmatprep.subr.bf16.mxu1 %v3629_v3  ;;  %2952 = vmatprep.mubr.msk.f32.mxu1 %vm3630_vm0, %v3631_v6 }
   0x3   :  { %11 = vsyncpa [#allocation3], 0  ;;  %v3267_v7 = vpack.c.bf16 %v28_v5, %v27_v2  ;;  %v24_v8 = vld [vmem:[%s4096_s0] sm:$0xff]  ;;  %vm36_vm1 = vcmask 261120   ;;  %s3632_s8 = smov 64   ;;  %v111_v15 = vld [vmem:[%s4098_s2 + $0x8] sm:$0xff] }
   0x4   :  { %3265 = vmatpush3.bf16.msra.mxu0 %v3264_v4  ;;  %v2728_v9 = vld [vmem:[%s4099_s3] ss:$0 sm:$0xff]  ;;  %v112_v23 = vld [vmem:[%s4098_s2 + $0x10] sm:$0xff]  ;;  %v113_v24 = vld [vmem:[%s4098_s2 + $0x18] sm:$0xff]  ;;  %s3633_s16 = smov 96   ;;  %vm2602_vm2 = vcmask 1040384  }
   0x5   :  { %3266 = vmatprep.subr.bf16.mxu0 %v3629_v3  ;;  %v110_v14 = vld [vmem:[%s4098_s2] sm:$0xff]  ;;  %v3724_v26 = vpack.c.bf16 %v113_v24, %v112_v23  ;;  %v3455_v28 = vpack.i.bf16 %v113_v24, %v112_v23  ;;  %s3634_s2 = smov 32   ;;  %vm2604_vm3 = vcmask 1041408   ;;  %vm2606_vm4 = vcmask 1042432   ;;  %s3635_s27 = smov [#allocation2]  }
   0x6   :  { %v3450_v16 = vpack.i.bf16 %v111_v15, %v110_v14  ;;  %v3710_v17 = vpack.c.bf16 %v111_v15, %v110_v14  ;;  %vm2608_vm5 = vcmask 1043456   ;;  %vm2610_vm6 = vcmask 1044480   ;;  %s2720_s28 = sshll.u32 %s3635_s27, 4  ;;  %s2721_s28 = int_to_ptr.vmem [resolvable:$true] %s2720_s28 }
   0x7   :  { %vm2612_vm7 = vcmask 1045504   ;;  %vm2614_vm8 = vcmask 1046528   ;;  %s3605_s29 = scalar_lea.vmem %s2721_s28, 128  ;;  %p3610_p1 = scmp.lt.s32.totalorder %s2721_s28, %s2721_s28 }
   0x8   :  { %3268 = vmatpush3.bf16.msra.mxu0 %v3267_v7  ;;  %3451 = vrot.lane.b32.xlu1 %v3450_v16, %s3632_s8  ;;  %p3606_p0 = scmp.ne.s32.totalorder %s2721_s28, %s3605_s29  ;;  %p3611_p2 = scmp.lt.s32.totalorder %s3605_s29, %s3605_s29 }
   0x9   :  { %3275 = vmatprep.subr.bf16.mxu0 %v3629_v3  ;;  %3271 = vmatpush3.bf16.msra.mxu1 %v3710_v17 }
   0xa   :  { %3272 = vmatprep.subr.bf16.mxu1 %v3629_v3  ;;  %p3612_p3 = por %p3611_p2, %p3610_p1 }
   0xb   :  { %2942 = vmatmul.mubr.msk.f32.vlgmr.msra.gmra.mrb[0].mxu0 %vm36_vm1, %v24_v8 }
   0xc   :  { %2963 = vmatprep.mubr.msk.f32.mxu0 %vm3630_vm0, %v3631_v6  ;;  %p3613_p4 = pnand %p3612_p3, %p3606_p0 }
   0xd   :  { %3274 = vmatpush3.bf16.msra.mxu1 %v3724_v26 }
   0xe   :  { %3281 = vmatprep.subr.bf16.mxu1 %v3629_v3 }
  0x7a   :  { %v3452_v31 = vpop.permute.xlu1 %3451 }
  0x7b   :  { %v3454_v32 = vunpack.i.h.bf16 %v3452_v31  ;;  %v3453_v33 = vunpack.i.l.bf16 %v3452_v31 }
  0x7d   :  { %v3739_v35 = vpack.c.bf16 %v3454_v32, %v3453_v33 }
  0xde   :  { %v106_v10 = vpop.f32.mrb[0].mxu0 }
  0xdf   :  { %v3700_v11 = vadd.f32 %v2728_v9, %v106_v10  ;;  %v2943_v12 = vpop.f32.mrb[1].mxu0 }
  0xe1   :  { %3480 = vtanh.f32 %v3700_v11  ;;  %v2730_v18 = vmul.f32 -1.442695, %v3700_v11 }
  0xe3   :  { %3482 = vpow2.f32 %v2730_v18 }
  0xeb   :  { %v3481_v13 = vpop.eup %3480 }
  0xec   :  { %122 = vrot.lane.b32.xlu0 %v3481_v13, %s3632_s8 }
  0xed   :  { %v3483_v19 = vpop.eup %3482 }
  0xee   :  { %v117_v20 = vadd.f32 1.0, %v3483_v19 }
  0xf0   :  { %3484 = vrcp.f32 %v117_v20 }
  0xfa   :  { %v3485_v21 = vpop.eup %3484 }
 0x15e   :  { %v123_v22 = vpop.permute.xlu0 %122 }
 0x15f   :  { %v3722_v25 = vmul.f32 %v3485_v21, %v123_v22 }
 0x161   :  { %3486 = vtanh.f32 %v3722_v25  ;;  %v499_v7 = vrot.slane %v3722_v25, 7 }
 0x16b   :  { %v3487_v27 = vpop.eup %3486 }
 0x16c   :  { %128 = vrot.lane.b32.xlu0 %v3487_v27, %s3633_s16 }
 0x170   :  { %3456 = vrot.lane.b32.xlu0 %v3455_v28, %s3632_s8 }
 0x174   :  { %3466 = vrot.lane.b32.xlu0 %v3455_v28, %s3633_s16 }
 0x178   :  { %3476 = vrot.lane.b32.xlu0 %v3455_v28, %s3634_s2 }
 0x1de   :  { %v129_v29 = vpop.permute.xlu0 %128 }
 0x1df   :  { %v3733_v30 = vmul.f32 %v3485_v21, %v129_v29 }
 0x1e1   :  { %133 = vrot.lane.b32.xlu1 %v3733_v30, %s3634_s2 }
 0x1e2   :  { %v3457_v34 = vpop.permute.xlu0 %3456 }
 0x1e3   :  { %v3459_v36 = vunpack.i.h.bf16 %v3457_v34  ;;  %v3458_v37 = vunpack.i.l.bf16 %v3457_v34 }
 0x1e5   :  { %3461 = vrot.lane.b32.xlu1 %v3450_v16, %s3633_s16  ;;  %v3742_v39 = vpack.c.bf16 %v3459_v36, %v3458_v37 }
 0x1e6   :  { %v3467_v40 = vpop.permute.xlu0 %3466 }
 0x1e7   :  { %v3469_v44 = vunpack.i.h.bf16 %v3467_v40  ;;  %v3468_v45 = vunpack.i.l.bf16 %v3467_v40 }
 0x1e9   :  { %3471 = vrot.lane.b32.xlu1 %v3450_v16, %s3634_s2  ;;  %v3752_v48 = vpack.c.bf16 %v3469_v44, %v3468_v45 }
 0x1ea   :  { %v3477_v51 = vpop.permute.xlu0 %3476 }
 0x1eb   :  { %v3479_v53 = vunpack.i.h.bf16 %v3477_v51  ;;  %v3478_v54 = vunpack.i.l.bf16 %v3477_v51 }
 0x1ed   :  { %v3768_v55 = vpack.c.bf16 %v3479_v53, %v3478_v54 }
 0x253   :  { %v134_v38 = vpop.permute.xlu1 %133 }
 0x254   :  { %2953 = vmatmul.mubr.msk.f32.vlgmr.msra.gmra.mrb[0].mxu1 %vm36_vm1, %v134_v38 }
 0x255   :  { %3283 = vmatpush3.bf16.msra.mxu1 %v3739_v35  ;;  %2974 = vmatprep.mubr.msk.f32.mxu1 %vm3630_vm0, %v3631_v6 }
 0x256   :  { %3284 = vmatprep.subr.bf16.mxu1 %v3629_v3 }
 0x257   :  { %v3462_v41 = vpop.permute.xlu1 %3461 }
 0x258   :  { %v3464_v42 = vunpack.i.h.bf16 %v3462_v41  ;;  %v3463_v43 = vunpack.i.l.bf16 %v3462_v41 }
 0x259   :  { %3286 = vmatpush3.bf16.msra.mxu1 %v3742_v39 }
 0x25a   :  { %v3749_v46 = vpack.c.bf16 %v3464_v42, %v3463_v43  ;;  %3293 = vmatprep.subr.bf16.mxu1 %v3629_v3 }
 0x25b   :  { %v3472_v47 = vpop.permute.xlu1 %3471 }
 0x25c   :  { %2975 = vmatmul.mubr.msk.f32.vlgmr.msra.gmra.mrb[2].mxu1 %vm36_vm1, %v134_v38  ;;  %3277 = vmatpush3.bf16.msra.mxu0 %v3749_v46  ;;  %v3474_v49 = vunpack.i.h.bf16 %v3472_v47  ;;  %v3473_v50 = vunpack.i.l.bf16 %v3472_v47 }
 0x25d   :  { %3278 = vmatprep.subr.bf16.mxu0 %v3629_v3  ;;  %3295 = vmatpush3.bf16.msra.mxu1 %v3710_v17 }
 0x25e   :  { %3296 = vmatprep.subr.bf16.mxu1 %v3629_v3  ;;  %2996 = vmatprep.mubr.msk.f32.mxu1 %vm3630_vm0, %v3631_v6  ;;  %v3761_v52 = vpack.c.bf16 %v3474_v49, %v3473_v50 }
 0x260   :  { %3280 = vmatpush3.bf16.msra.mxu0 %v3752_v48 }
 0x261   :  { %3287 = vmatprep.subr.bf16.mxu0 %v3629_v3  ;;  %3298 = vmatpush3.bf16.msra.mxu1 %v3724_v26 }
 0x262   :  { %3305 = vmatprep.subr.bf16.mxu1 %v3629_v3 }
 0x263   :  { %2964 = vmatmul.mubr.msk.f32.vlgmr.msra.gmra.mrb[2].mxu0 %vm36_vm1, %v134_v38 }
 0x264   :  { %3289 = vmatpush3.bf16.msra.mxu0 %v3761_v52  ;;  %2985 = vmatprep.mubr.msk.f32.mxu0 %vm3630_vm0, %v3631_v6 }
 0x265   :  { %3290 = vmatprep.subr.bf16.mxu0 %v3629_v3 }
 0x268   :  { %3292 = vmatpush3.bf16.msra.mxu0 %v3768_v55 }
 0x269   :  { %3299 = vmatprep.subr.bf16.mxu0 %v3629_v3 }
 0x26b   :  { %2986 = vmatmul.mubr.msk.f32.vlgmr.msra.gmra.mrb[4].mxu0 %vm36_vm1, %v134_v38 }
 0x26c   :  { %3301 = vmatpush3.bf16.msra.mxu0 %v3749_v46  ;;  %3007 = vmatprep.mubr.msk.f32.mxu0 %vm3630_vm0, %v3631_v6 }
 0x26d   :  { %3302 = vmatprep.subr.bf16.mxu0 %v3629_v3 }
 0x270   :  { %3304 = vmatpush3.bf16.msra.mxu0 %v3752_v48 }
 0x271   :  { %3311 = vmatprep.subr.bf16.mxu0 %v3629_v3 }
 0x327   :  { %v203_v56 = vpop.f32.mrb[0].mxu1 }
 0x328   :  { %v2954_v57 = vpop.f32.mrb[1].mxu1  ;;  %v208_v9 = vrot.slane %v203_v56, 7 }
 0x32a   :  { %v210_v10 = vadd.f32 %v208_v9, %v3700_v11 }
 0x32c   :  { %v2735_v12 = vmul.f32 -1.442695, %v210_v10 }
 0x32f   :  { %v381_v58 = vpop.f32.mrb[2].mxu1 }
 0x330   :  { %v386_v59 = vrot.slane %v381_v58, 7  ;;  %v2976_v60 = vpop.f32.mrb[3].mxu1 }
 0x332   :  { %387 = vrot.lane.b32.xlu1 %v386_v59, %s3632_s8 }
 0x336   :  { %v293_v61 = vpop.f32.mrb[2].mxu0 }
 0x337   :  { %v298_v62 = vrot.slane %v293_v61, 7  ;;  %v2965_v63 = vpop.f32.mrb[3].mxu0 }
 0x339   :  { %299 = vrot.lane.b32.xlu1 %v298_v62, %s3634_s2 }
 0x33e   :  { %v469_v0 = vpop.f32.mrb[4].mxu0 }
 0x33f   :  { %v2987_v1 = vpop.f32.mrb[5].mxu0  ;;  %v474_v8 = vrot.slane %v469_v0, 7 }
 0x3a4   :  { %v388_v2 = vpop.permute.xlu1 %387 }
 0x3a5   :  { %v390_v4 = vadd.f32 %v388_v2, %v3700_v11 }
 0x3a7   :  { %3488 = vtanh.f32 %v390_v4 }
 0x3a8   :  { %3490 = vpow2.f32 %v2735_v12 }
 0x3ab   :  { %v300_v19 = vpop.permute.xlu1 %299 }
 0x3ac   :  { %v302_v20 = vadd.f32 %v300_v19, %v3700_v11 }
 0x3ae   :  { %v2736_v21 = vmul.f32 -1.442695, %v302_v20 }
 0x3b1   :  { %v3489_v5 = vpop.eup %3488 }
 0x3b2   :  { %505 = vrot.lane.b32.xlu0 %v3489_v5, %s3632_s8  ;;  %v3491_v13 = vpop.eup %3490 }
 0x3b3   :  { %v482_v14 = vadd.f32 1.0, %v3491_v13 }
 0x3b5   :  { %3492 = vrcp.f32 %v482_v14 }
 0x3b6   :  { %500 = vrot.lane.b32.xlu0 %v499_v7, %s3634_s2  ;;  %3494 = vpow2.f32 %v2736_v21 }
 0x3ba   :  { %475 = vrot.lane.b32.xlu0 %v474_v8, %s3633_s16 }
 0x3bf   :  { %v3493_v15 = vpop.eup %3492 }
 0x3c0   :  { %v3495_v22 = vpop.eup %3494 }
 0x3c1   :  { %v488_v23 = vadd.f32 1.0, %v3495_v22 }
 0x3c3   :  { %3496 = vrcp.f32 %v488_v23 }
 0x3cd   :  { %v3497_v25 = vpop.eup %3496 }
 0x424   :  { %v506_v16 = vpop.permute.xlu0 %505 }
 0x425   :  { %v508_v18 = vmul.f32 %v3493_v15, %v506_v16 }
 0x427   :  { %510 = vrot.lane.b32.xlu1 %v508_v18, %s3634_s2 }
 0x428   :  { %v501_v24 = vpop.permute.xlu0 %500 }
 0x429   :  { %v503_v27 = vmul.f32 %v3497_v25, %v501_v24 }
 0x42c   :  { %v476_v32 = vpop.permute.xlu0 %475 }
 0x42d   :  { %v478_v33 = vadd.f32 %v476_v32, %v3700_v11 }
 0x42f   :  { %v2737_v34 = vmul.f32 -1.442695, %v478_v33 }
 0x499   :  { %v511_v28 = vpop.permute.xlu1 %510 }
 0x49a   :  { %v3793_v29 = vadd.f32 %v511_v28, %v503_v27 }
 0x49c   :  { %3498 = vtanh.f32 %v3793_v29  ;;  %v848_v15 = vrot.slane %v3793_v29, 7 }
 0x49d   :  { %3500 = vpow2.f32 %v2737_v34 }
 0x4a6   :  { %v3499_v31 = vpop.eup %3498 }
 0x4a7   :  { %516 = vrot.lane.b32.xlu1 %v3499_v31, %s3632_s8  ;;  %v3501_v36 = vpop.eup %3500 }
 0x4a8   :  { %v495_v37 = vadd.f32 1.0, %v3501_v36 }
 0x4aa   :  { %3502 = vrcp.f32 %v495_v37 }
 0x4b4   :  { %v3503_v38 = vpop.eup %3502 }
 0x519   :  { %v517_v40 = vpop.permute.xlu1 %516 }
 0x51a   :  { %v3798_v41 = vmul.f32 %v3503_v38, %v517_v40 }
 0x51c   :  { %v521_v42 = vrot.slane %v3798_v41, 1  ;;  %v2603_v31 = vsel %vm2602_vm2, %v3733_v30, %v3798_v41 }
 0x51e   :  { %522 = vrot.lane.b32.xlu0 %v521_v42, %s3634_s2 }
 0x590   :  { %v523_v43 = vpop.permute.xlu0 %522 }
 0x591   :  { %2997 = vmatmul.mubr.msk.f32.vlgmr.msra.gmra.mrb[4].mxu1 %vm36_vm1, %v523_v43  ;;  %3008 = vmatmul.mubr.msk.f32.vlgmr.msra.gmra.mrb[6].mxu0 %vm36_vm1, %v523_v43 }
 0x592   :  { %3307 = vmatpush3.bf16.msra.mxu1 %v3739_v35  ;;  %3313 = vmatpush3.bf16.msra.mxu0 %v3761_v52 }
 0x593   :  { %3308 = vmatprep.subr.bf16.mxu1 %v3629_v3  ;;  %3314 = vmatprep.subr.bf16.mxu0 %v3629_v3 }
 0x594   :  { %3018 = vmatprep.mubr.msk.f32.mxu1 %vm3630_vm0, %v3631_v6  ;;  %3029 = vmatprep.mubr.msk.f32.mxu0 %vm3630_vm0, %v3631_v6 }
 0x596   :  { %3310 = vmatpush3.bf16.msra.mxu1 %v3742_v39  ;;  %3316 = vmatpush3.bf16.msra.mxu0 %v3768_v55 }
 0x597   :  { %3323 = vmatprep.subr.bf16.mxu0 %v3629_v3  ;;  %3317 = vmatprep.subr.bf16.mxu1 %v3629_v3 }
 0x599   :  { %3019 = vmatmul.mubr.msk.f32.vlgmr.msra.gmra.mrb[6].mxu1 %vm36_vm1, %v523_v43  ;;  %3030 = vmatmul.mubr.msk.f32.vlgmr.msra.gmra.mrb[8].mxu0 %vm36_vm1, %v523_v43 }
 0x59a   :  { %3325 = vmatpush3.bf16.msra.mxu0 %v3749_v46  ;;  %3319 = vmatpush3.bf16.msra.mxu1 %v3710_v17 }
 0x59b   :  { %3326 = vmatprep.subr.bf16.mxu0 %v3629_v3  ;;  %3320 = vmatprep.subr.bf16.mxu1 %v3629_v3 }
 0x59c   :  { %3040 = vmatprep.mubr.msk.f32.mxu1 %vm3630_vm0, %v3631_v6  ;;  %3051 = vmatprep.mubr.msk.f32.mxu0 %vm3630_vm0, %v3631_v6 }
 0x59e   :  { %3328 = vmatpush3.bf16.msra.mxu0 %v3752_v48  ;;  %3322 = vmatpush3.bf16.msra.mxu1 %v3724_v26 }
 0x59f   :  { %3329 = vmatprep.subr.bf16.mxu1 %v3629_v3  ;;  %3335 = vmatprep.subr.bf16.mxu0 %v3629_v3 }
 0x664   :  { %v592_v44 = vpop.f32.mrb[4].mxu1  ;;  %v666_v45 = vpop.f32.mrb[6].mxu0 }
 0x665   :  { %v2998_v47 = vpop.f32.mrb[5].mxu1  ;;  %v3009_v49 = vpop.f32.mrb[7].mxu0  ;;  %v671_v57 = vrot.slane %v666_v45, 6  ;;  %v597_v62 = vrot.slane %v592_v44, 6 }
 0x667   :  { %v599_v63 = vadd.f32 %v597_v62, %v3700_v11 }
 0x669   :  { %v2742_v0 = vmul.f32 -1.442695, %v599_v63 }
 0x66c   :  { %v742_v50 = vpop.f32.mrb[6].mxu1  ;;  %v818_v51 = vpop.f32.mrb[8].mxu0 }
 0x66d   :  { %v747_v53 = vrot.slane %v742_v50, 6  ;;  %v3020_v54 = vpop.f32.mrb[7].mxu1  ;;  %v3031_v56 = vpop.f32.mrb[9].mxu0  ;;  %v823_v58 = vrot.slane %v818_v51, 6 }
 0x66f   :  { %748 = vrot.lane.b32.xlu1 %v747_v53, %s3632_s8 }
 0x673   :  { %672 = vrot.lane.b32.xlu1 %v671_v57, %s3634_s2 }
 0x677   :  { %824 = vrot.lane.b32.xlu1 %v823_v58, %s3633_s16 }
 0x6e1   :  { %v749_v59 = vpop.permute.xlu1 %748 }
 0x6e2   :  { %v751_v60 = vadd.f32 %v749_v59, %v3700_v11 }
 0x6e4   :  { %3504 = vtanh.f32 %v751_v60 }
 0x6e5   :  { %3506 = vpow2.f32 %v2742_v0  ;;  %v673_v8 = vpop.permute.xlu1 %672 }
 0x6e6   :  { %v675_v9 = vadd.f32 %v673_v8, %v3700_v11 }
 0x6e8   :  { %v2743_v10 = vmul.f32 -1.442695, %v675_v9 }
 0x6e9   :  { %v825_v21 = vpop.permute.xlu1 %824 }
 0x6ea   :  { %v827_v22 = vadd.f32 %v825_v21, %v3700_v11 }
 0x6ec   :  { %v2744_v23 = vmul.f32 -1.442695, %v827_v22 }
 0x6ee   :  { %v3505_v61 = vpop.eup %3504 }
 0x6ef   :  { %852 = vrot.lane.b32.xlu0 %v3505_v61, %s3632_s8  ;;  %v3507_v1 = vpop.eup %3506 }
 0x6f0   :  { %v831_v2 = vadd.f32 1.0, %v3507_v1 }
 0x6f2   :  { %3508 = vrcp.f32 %v831_v2 }
 0x6f3   :  { %3510 = vpow2.f32 %v2743_v10 }
 0x6fc   :  { %v3509_v4 = vpop.eup %3508 }
 0x6fd   :  { %v3511_v12 = vpop.eup %3510 }
 0x6fe   :  { %v837_v13 = vadd.f32 1.0, %v3511_v12 }
 0x700   :  { %3512 = vrcp.f32 %v837_v13 }
 0x70a   :  { %v3513_v14 = vpop.eup %3512 }
 0x70b   :  { %v850_v16 = vmul.f32 %v3513_v14, %v848_v15 }
 0x761   :  { %v853_v5 = vpop.permute.xlu0 %852 }
 0x762   :  { %v855_v7 = vmul.f32 %v3509_v4, %v853_v5 }
 0x764   :  { %857 = vrot.lane.b32.xlu0 %v855_v7, %s3634_s2 }
 0x7d6   :  { %v858_v18 = vpop.permute.xlu0 %857 }
 0x7d7   :  { %v3839_v19 = vadd.f32 %v858_v18, %v850_v16 }
 0x7d9   :  { %3514 = vtanh.f32 %v3839_v19  ;;  %v1195_v5 = vrot.slane %v3839_v19, 7 }
 0x7da   :  { %3516 = vpow2.f32 %v2744_v23 }
 0x7e3   :  { %v3515_v20 = vpop.eup %3514 }
 0x7e4   :  { %863 = vrot.lane.b32.xlu0 %v3515_v20, %s3632_s8  ;;  %v3517_v24 = vpop.eup %3516 }
 0x7e5   :  { %v844_v25 = vadd.f32 1.0, %v3517_v24 }
 0x7e7   :  { %3518 = vrcp.f32 %v844_v25 }
 0x7f1   :  { %v3519_v27 = vpop.eup %3518 }
 0x856   :  { %v864_v28 = vpop.permute.xlu0 %863 }
 0x857   :  { %v866_v29 = vmul.f32 %v3519_v27, %v864_v28 }
 0x859   :  { %v868_v32 = vrot.slane %v866_v29, 2  ;;  %v3846_v33 = vsel %vm2604_vm3, %v2603_v31, %v866_v29 }
 0x85b   :  { %869 = vrot.lane.b32.xlu1 %v868_v32, %s3634_s2 }
 0x8cd   :  { %v870_v34 = vpop.permute.xlu1 %869 }
 0x8ce   :  { %3041 = vmatmul.mubr.msk.f32.vlgmr.msra.gmra.mrb[8].mxu1 %vm36_vm1, %v870_v34  ;;  %3052 = vmatmul.mubr.msk.f32.vlgmr.msra.gmra.mrb[10].mxu0 %vm36_vm1, %v870_v34 }
 0x8cf   :  { %3331 = vmatpush3.bf16.msra.mxu1 %v3739_v35  ;;  %3337 = vmatpush3.bf16.msra.mxu0 %v3761_v52 }
 0x8d0   :  { %3332 = vmatprep.subr.bf16.mxu1 %v3629_v3  ;;  %3338 = vmatprep.subr.bf16.mxu0 %v3629_v3 }
 0x8d1   :  { %3062 = vmatprep.mubr.msk.f32.mxu1 %vm3630_vm0, %v3631_v6  ;;  %3073 = vmatprep.mubr.msk.f32.mxu0 %vm3630_vm0, %v3631_v6 }
 0x8d3   :  { %3334 = vmatpush3.bf16.msra.mxu1 %v3742_v39  ;;  %3340 = vmatpush3.bf16.msra.mxu0 %v3768_v55 }
 0x8d4   :  { %3347 = vmatprep.subr.bf16.mxu0 %v3629_v3  ;;  %3341 = vmatprep.subr.bf16.mxu1 %v3629_v3 }
 0x8d6   :  { %3063 = vmatmul.mubr.msk.f32.vlgmr.msra.gmra.mrb[10].mxu1 %vm36_vm1, %v870_v34  ;;  %3074 = vmatmul.mubr.msk.f32.vlgmr.msra.gmra.mrb[12].mxu0 %vm36_vm1, %v870_v34 }
 0x8d7   :  { %3349 = vmatpush3.bf16.msra.mxu0 %v3749_v46  ;;  %3343 = vmatpush3.bf16.msra.mxu1 %v3710_v17 }
 0x8d8   :  { %3350 = vmatprep.subr.bf16.mxu0 %v3629_v3  ;;  %3344 = vmatprep.subr.bf16.mxu1 %v3629_v3 }
 0x8d9   :  { %3084 = vmatprep.mubr.msk.f32.mxu1 %vm3630_vm0, %v3631_v6  ;;  %3095 = vmatprep.mubr.msk.f32.mxu0 %vm3630_vm0, %v3631_v6 }
 0x8db   :  { %3352 = vmatpush3.bf16.msra.mxu0 %v3752_v48  ;;  %3346 = vmatpush3.bf16.msra.mxu1 %v3724_v26 }
 0x8dc   :  { %3353 = vmatprep.subr.bf16.mxu1 %v3629_v3  ;;  %3359 = vmatprep.subr.bf16.mxu0 %v3629_v3 }
 0x9a1   :  { %v939_v30 = vpop.f32.mrb[8].mxu1  ;;  %v1013_v36 = vpop.f32.mrb[10].mxu0 }
 0x9a2   :  { %v3042_v37 = vpop.f32.mrb[9].mxu1  ;;  %v3053_v38 = vpop.f32.mrb[11].mxu0  ;;  %v1018_v45 = vrot.slane %v1013_v36, 5  ;;  %v944_v53 = vrot.slane %v939_v30, 5 }
 0x9a4   :  { %v946_v54 = vadd.f32 %v944_v53, %v3700_v11 }
 0x9a6   :  { %v2749_v56 = vmul.f32 -1.442695, %v946_v54 }
 0x9a9   :  { %v1089_v40 = vpop.f32.mrb[10].mxu1  ;;  %v1165_v41 = vpop.f32.mrb[12].mxu0 }
 0x9aa   :  { %v1094_v42 = vrot.slane %v1089_v40, 5  ;;  %v3064_v43 = vpop.f32.mrb[11].mxu1  ;;  %v3075_v44 = vpop.f32.mrb[13].mxu0  ;;  %v1170_v47 = vrot.slane %v1165_v41, 5 }
 0x9ac   :  { %1095 = vrot.lane.b32.xlu0 %v1094_v42, %s3632_s8 }
 0x9b0   :  { %1019 = vrot.lane.b32.xlu0 %v1018_v45, %s3634_s2 }
 0x9b4   :  { %1171 = vrot.lane.b32.xlu0 %v1170_v47, %s3633_s16 }
 0xa1e   :  { %v1096_v49 = vpop.permute.xlu0 %1095 }
 0xa1f   :  { %v1098_v50 = vadd.f32 %v1096_v49, %v3700_v11 }
 0xa21   :  { %3520 = vtanh.f32 %v1098_v50 }
 0xa22   :  { %3522 = vpow2.f32 %v2749_v56  ;;  %v1020_v62 = vpop.permute.xlu0 %1019 }
 0xa23   :  { %v1022_v63 = vadd.f32 %v1020_v62, %v3700_v11 }
 0xa25   :  { %v2750_v0 = vmul.f32 -1.442695, %v1022_v63 }
 0xa26   :  { %v1172_v12 = vpop.permute.xlu0 %1171 }
 0xa27   :  { %v1174_v13 = vadd.f32 %v1172_v12, %v3700_v11 }
 0xa29   :  { %v2751_v14 = vmul.f32 -1.442695, %v1174_v13 }
 0xa2b   :  { %v3521_v51 = vpop.eup %3520 }
 0xa2c   :  { %1199 = vrot.lane.b32.xlu1 %v3521_v51, %s3632_s8  ;;  %v3523_v57 = vpop.eup %3522 }
 0xa2d   :  { %v1178_v58 = vadd.f32 1.0, %v3523_v57 }
 0xa2f   :  { %3524 = vrcp.f32 %v1178_v58 }
 0xa30   :  { %3526 = vpow2.f32 %v2750_v0 }
 0xa39   :  { %v3525_v59 = vpop.eup %3524 }
 0xa3a   :  { %v3527_v1 = vpop.eup %3526 }
 0xa3b   :  { %v1184_v2 = vadd.f32 1.0, %v3527_v1 }
 0xa3d   :  { %3528 = vrcp.f32 %v1184_v2 }
 0xa47   :  { %v3529_v4 = vpop.eup %3528 }
 0xa48   :  { %v1197_v7 = vmul.f32 %v3529_v4, %v1195_v5 }
 0xa9e   :  { %v1200_v60 = vpop.permute.xlu1 %1199 }
 0xa9f   :  { %v1202_v61 = vmul.f32 %v3525_v59, %v1200_v60 }
 0xaa1   :  { %1204 = vrot.lane.b32.xlu1 %v1202_v61, %s3634_s2 }
 0xb13   :  { %v1205_v8 = vpop.permute.xlu1 %1204 }
 0xb14   :  { %v3886_v9 = vadd.f32 %v1205_v8, %v1197_v7 }
 0xb16   :  { %3530 = vtanh.f32 %v3886_v9  ;;  %v1542_v59 = vrot.slane %v3886_v9, 7 }
 0xb17   :  { %3532 = vpow2.f32 %v2751_v14 }
 0xb20   :  { %v3531_v10 = vpop.eup %3530 }
 0xb21   :  { %1210 = vrot.lane.b32.xlu1 %v3531_v10, %s3632_s8  ;;  %v3533_v15 = vpop.eup %3532 }
 0xb22   :  { %v1191_v16 = vadd.f32 1.0, %v3533_v15 }
 0xb24   :  { %3534 = vrcp.f32 %v1191_v16 }
 0xb2e   :  { %v3535_v18 = vpop.eup %3534 }
 0xb93   :  { %v1211_v19 = vpop.permute.xlu1 %1210 }
 0xb94   :  { %v1213_v20 = vmul.f32 %v3535_v18, %v1211_v19 }
 0xb96   :  { %v1215_v21 = vrot.slane %v1213_v20, 3  ;;  %v3892_v22 = vsel %vm2606_vm4, %v3846_v33, %v1213_v20 }
 0xb98   :  { %1216 = vrot.lane.b32.xlu0 %v1215_v21, %s3634_s2 }
 0xc0a   :  { %v1217_v23 = vpop.permute.xlu0 %1216 }
 0xc0b   :  { %3085 = vmatmul.mubr.msk.f32.vlgmr.msra.gmra.mrb[12].mxu1 %vm36_vm1, %v1217_v23  ;;  %3096 = vmatmul.mubr.msk.f32.vlgmr.msra.gmra.mrb[14].mxu0 %vm36_vm1, %v1217_v23 }
 0xc0c   :  { %3355 = vmatpush3.bf16.msra.mxu1 %v3739_v35  ;;  %3361 = vmatpush3.bf16.msra.mxu0 %v3761_v52 }
 0xc0d   :  { %3356 = vmatprep.subr.bf16.mxu1 %v3629_v3  ;;  %3362 = vmatprep.subr.bf16.mxu0 %v3629_v3 }
 0xc0e   :  { %3106 = vmatprep.mubr.msk.f32.mxu1 %vm3630_vm0, %v3631_v6  ;;  %3117 = vmatprep.mubr.msk.f32.mxu0 %vm3630_vm0, %v3631_v6 }
 0xc10   :  { %3358 = vmatpush3.bf16.msra.mxu1 %v3742_v39  ;;  %3364 = vmatpush3.bf16.msra.mxu0 %v3768_v55 }
 0xc11   :  { %3371 = vmatprep.subr.bf16.mxu0 %v3629_v3  ;;  %3365 = vmatprep.subr.bf16.mxu1 %v3629_v3 }
 0xc13   :  { %3107 = vmatmul.mubr.msk.f32.vlgmr.msra.gmra.mrb[14].mxu1 %vm36_vm1, %v1217_v23  ;;  %3118 = vmatmul.mubr.msk.f32.vlgmr.msra.gmra.mrb[16].mxu0 %vm36_vm1, %v1217_v23 }
 0xc14   :  { %3373 = vmatpush3.bf16.msra.mxu0 %v3749_v46  ;;  %3367 = vmatpush3.bf16.msra.mxu1 %v3710_v17 }
 0xc15   :  { %3374 = vmatprep.subr.bf16.mxu0 %v3629_v3  ;;  %3368 = vmatprep.subr.bf16.mxu1 %v3629_v3 }
 0xc16   :  { %3128 = vmatprep.mubr.msk.f32.mxu1 %vm3630_vm0, %v3631_v6  ;;  %3139 = vmatprep.mubr.msk.f32.mxu0 %vm3630_vm0, %v3631_v6 }
 0xc18   :  { %3376 = vmatpush3.bf16.msra.mxu0 %v3752_v48  ;;  %3370 = vmatpush3.bf16.msra.mxu1 %v3724_v26 }
 0xc19   :  { %3377 = vmatprep.subr.bf16.mxu1 %v3629_v3  ;;  %3383 = vmatprep.subr.bf16.mxu0 %v3629_v3 }
 0xcde   :  { %v1286_v24 = vpop.f32.mrb[12].mxu1  ;;  %v1360_v25 = vpop.f32.mrb[14].mxu0 }
 0xcdf   :  { %v3086_v27 = vpop.f32.mrb[13].mxu1  ;;  %v3097_v28 = vpop.f32.mrb[15].mxu0  ;;  %v1365_v30 = vrot.slane %v1360_v25, 4  ;;  %v1291_v41 = vrot.slane %v1286_v24, 4 }
 0xce1   :  { %v1293_v42 = vadd.f32 %v1291_v41, %v3700_v11 }
 0xce3   :  { %v2756_v43 = vmul.f32 -1.442695, %v1293_v42 }
 0xce6   :  { %v1436_v29 = vpop.f32.mrb[14].mxu1  ;;  %v1512_v31 = vpop.f32.mrb[16].mxu0 }
 0xce7   :  { %v1441_v32 = vrot.slane %v1436_v29, 4  ;;  %v3108_v33 = vpop.f32.mrb[15].mxu1  ;;  %v3119_v34 = vpop.f32.mrb[17].mxu0  ;;  %v1517_v36 = vrot.slane %v1512_v31, 4 }
 0xce9   :  { %1442 = vrot.lane.b32.xlu1 %v1441_v32, %s3632_s8 }
 0xced   :  { %1366 = vrot.lane.b32.xlu1 %v1365_v30, %s3634_s2 }
 0xcf1   :  { %1518 = vrot.lane.b32.xlu1 %v1517_v36, %s3633_s16 }
 0xd5b   :  { %v1443_v37 = vpop.permute.xlu1 %1442 }
 0xd5c   :  { %v1445_v38 = vadd.f32 %v1443_v37, %v3700_v11 }
 0xd5e   :  { %3536 = vtanh.f32 %v1445_v38 }
 0xd5f   :  { %3538 = vpow2.f32 %v2756_v43  ;;  %v1367_v51 = vpop.permute.xlu1 %1366 }
 0xd60   :  { %v1369_v53 = vadd.f32 %v1367_v51, %v3700_v11 }
 0xd62   :  { %v2757_v54 = vmul.f32 -1.442695, %v1369_v53 }
 0xd63   :  { %v1519_v0 = vpop.permute.xlu1 %1518 }
 0xd64   :  { %v1521_v1 = vadd.f32 %v1519_v0, %v3700_v11 }
 0xd66   :  { %v2758_v2 = vmul.f32 -1.442695, %v1521_v1 }
 0xd68   :  { %v3537_v40 = vpop.eup %3536 }
 0xd69   :  { %1546 = vrot.lane.b32.xlu0 %v3537_v40, %s3632_s8  ;;  %v3539_v44 = vpop.eup %3538 }
 0xd6a   :  { %v1525_v45 = vadd.f32 1.0, %v3539_v44 }
 0xd6c   :  { %3540 = vrcp.f32 %v1525_v45 }
 0xd6d   :  { %3542 = vpow2.f32 %v2757_v54 }
 0xd76   :  { %v3541_v47 = vpop.eup %3540 }
 0xd77   :  { %v3543_v56 = vpop.eup %3542 }
 0xd78   :  { %v1531_v57 = vadd.f32 1.0, %v3543_v56 }
 0xd7a   :  { %3544 = vrcp.f32 %v1531_v57 }
 0xd84   :  { %v3545_v58 = vpop.eup %3544 }
 0xd85   :  { %v1544_v60 = vmul.f32 %v3545_v58, %v1542_v59 }
 0xddb   :  { %v1547_v49 = vpop.permute.xlu0 %1546 }
 0xddc   :  { %v1549_v50 = vmul.f32 %v3541_v47, %v1547_v49 }
 0xdde   :  { %1551 = vrot.lane.b32.xlu0 %v1549_v50, %s3634_s2 }
 0xe50   :  { %v1552_v61 = vpop.permute.xlu0 %1551 }
 0xe51   :  { %v3932_v62 = vadd.f32 %v1552_v61, %v1544_v60 }
 0xe53   :  { %3546 = vtanh.f32 %v3932_v62  ;;  %v1889_v47 = vrot.slane %v3932_v62, 7 }
 0xe54   :  { %3548 = vpow2.f32 %v2758_v2 }
 0xe5d   :  { %v3547_v63 = vpop.eup %3546 }
 0xe5e   :  { %1557 = vrot.lane.b32.xlu0 %v3547_v63, %s3632_s8  ;;  %v3549_v4 = vpop.eup %3548 }
 0xe5f   :  { %v1538_v5 = vadd.f32 1.0, %v3549_v4 }
 0xe61   :  { %3550 = vrcp.f32 %v1538_v5 }
 0xe6b   :  { %v3551_v7 = vpop.eup %3550 }
 0xed0   :  { %v1558_v8 = vpop.permute.xlu0 %1557 }
 0xed1   :  { %v1560_v9 = vmul.f32 %v3551_v7, %v1558_v8 }
 0xed3   :  { %v1562_v10 = vrot.slane %v1560_v9, 4  ;;  %v3938_v12 = vsel %vm2608_vm5, %v3892_v22, %v1560_v9 }
 0xed5   :  { %1563 = vrot.lane.b32.xlu1 %v1562_v10, %s3634_s2 }
 0xf47   :  { %v1564_v13 = vpop.permute.xlu1 %1563 }
 0xf48   :  { %3129 = vmatmul.mubr.msk.f32.vlgmr.msra.gmra.mrb[16].mxu1 %vm36_vm1, %v1564_v13  ;;  %3140 = vmatmul.mubr.msk.f32.vlgmr.msra.gmra.mrb[18].mxu0 %vm36_vm1, %v1564_v13 }
 0xf49   :  { %3379 = vmatpush3.bf16.msra.mxu1 %v3739_v35  ;;  %3385 = vmatpush3.bf16.msra.mxu0 %v3761_v52 }
 0xf4a   :  { %3380 = vmatprep.subr.bf16.mxu1 %v3629_v3  ;;  %3386 = vmatprep.subr.bf16.mxu0 %v3629_v3 }
 0xf4b   :  { %3150 = vmatprep.mubr.msk.f32.mxu1 %vm3630_vm0, %v3631_v6  ;;  %3161 = vmatprep.mubr.msk.f32.mxu0 %vm3630_vm0, %v3631_v6 }
 0xf4d   :  { %3382 = vmatpush3.bf16.msra.mxu1 %v3742_v39  ;;  %3388 = vmatpush3.bf16.msra.mxu0 %v3768_v55 }
 0xf4e   :  { %3395 = vmatprep.subr.bf16.mxu0 %v3629_v3  ;;  %3389 = vmatprep.subr.bf16.mxu1 %v3629_v3 }
 0xf50   :  { %3151 = vmatmul.mubr.msk.f32.vlgmr.msra.gmra.mrb[18].mxu1 %vm36_vm1, %v1564_v13  ;;  %3162 = vmatmul.mubr.msk.f32.vlgmr.msra.gmra.mrb[20].mxu0 %vm36_vm1, %v1564_v13 }
 0xf51   :  { %3397 = vmatpush3.bf16.msra.mxu0 %v3749_v46  ;;  %3391 = vmatpush3.bf16.msra.mxu1 %v3710_v17 }
 0xf52   :  { %3398 = vmatprep.subr.bf16.mxu0 %v3629_v3  ;;  %3392 = vmatprep.subr.bf16.mxu1 %v3629_v3 }
 0xf53   :  { %3172 = vmatprep.mubr.msk.f32.mxu1 %vm3630_vm0, %v3631_v6  ;;  %3183 = vmatprep.mubr.msk.f32.mxu0 %vm3630_vm0, %v3631_v6 }
 0xf55   :  { %3400 = vmatpush3.bf16.msra.mxu0 %v3752_v48  ;;  %3394 = vmatpush3.bf16.msra.mxu1 %v3724_v26 }
 0xf56   :  { %3401 = vmatprep.subr.bf16.mxu1 %v3629_v3  ;;  %3407 = vmatprep.subr.bf16.mxu0 %v3629_v3 }
0x101b   :  { %v1633_v14 = vpop.f32.mrb[16].mxu1  ;;  %v1707_v15 = vpop.f32.mrb[18].mxu0 }
0x101c   :  { %v3130_v16 = vpop.f32.mrb[17].mxu1  ;;  %v3141_v18 = vpop.f32.mrb[19].mxu0  ;;  %v1712_v24 = vrot.slane %v1707_v15, 3  ;;  %v1638_v31 = vrot.slane %v1633_v14, 3 }
0x101e   :  { %v1640_v32 = vadd.f32 %v1638_v31, %v3700_v11 }
0x1020   :  { %v2763_v33 = vmul.f32 -1.442695, %v1640_v32 }
0x1023   :  { %v1783_v19 = vpop.f32.mrb[18].mxu1  ;;  %v1859_v20 = vpop.f32.mrb[20].mxu0 }
0x1024   :  { %v1788_v21 = vrot.slane %v1783_v19, 3  ;;  %v3152_v22 = vpop.f32.mrb[19].mxu1  ;;  %v3163_v23 = vpop.f32.mrb[21].mxu0  ;;  %v1864_v25 = vrot.slane %v1859_v20, 3 }
0x1026   :  { %1789 = vrot.lane.b32.xlu0 %v1788_v21, %s3632_s8 }
0x102a   :  { %1713 = vrot.lane.b32.xlu0 %v1712_v24, %s3634_s2 }
0x102e   :  { %1865 = vrot.lane.b32.xlu0 %v1864_v25, %s3633_s16 }
0x1098   :  { %v1790_v27 = vpop.permute.xlu0 %1789 }
0x1099   :  { %v1792_v28 = vadd.f32 %v1790_v27, %v3700_v11 }
0x109b   :  { %3552 = vtanh.f32 %v1792_v28 }
0x109c   :  { %3554 = vpow2.f32 %v2763_v33  ;;  %v1714_v40 = vpop.permute.xlu0 %1713 }
0x109d   :  { %v1716_v41 = vadd.f32 %v1714_v40, %v3700_v11 }
0x109f   :  { %v2764_v42 = vmul.f32 -1.442695, %v1716_v41 }
0x10a0   :  { %v1866_v54 = vpop.permute.xlu0 %1865 }
0x10a1   :  { %v1868_v56 = vadd.f32 %v1866_v54, %v3700_v11 }
0x10a3   :  { %v2765_v57 = vmul.f32 -1.442695, %v1868_v56 }
0x10a5   :  { %v3553_v29 = vpop.eup %3552 }
0x10a6   :  { %1893 = vrot.lane.b32.xlu1 %v3553_v29, %s3632_s8  ;;  %v3555_v34 = vpop.eup %3554 }
0x10a7   :  { %v1872_v30 = vadd.f32 1.0, %v3555_v34 }
0x10a9   :  { %3556 = vrcp.f32 %v1872_v30 }
0x10aa   :  { %3558 = vpow2.f32 %v2764_v42 }
0x10b3   :  { %v3557_v36 = vpop.eup %3556 }
0x10b4   :  { %v3559_v43 = vpop.eup %3558 }
0x10b5   :  { %v1878_v44 = vadd.f32 1.0, %v3559_v43 }
0x10b7   :  { %3560 = vrcp.f32 %v1878_v44 }
0x10c1   :  { %v3561_v45 = vpop.eup %3560 }
0x10c2   :  { %v1891_v49 = vmul.f32 %v3561_v45, %v1889_v47 }
0x1118   :  { %v1894_v37 = vpop.permute.xlu1 %1893 }
0x1119   :  { %v1896_v38 = vmul.f32 %v3557_v36, %v1894_v37 }
0x111b   :  { %1898 = vrot.lane.b32.xlu1 %v1896_v38, %s3634_s2 }
0x118d   :  { %v1899_v50 = vpop.permute.xlu1 %1898 }
0x118e   :  { %v3978_v51 = vadd.f32 %v1899_v50, %v1891_v49 }
0x1190   :  { %3562 = vtanh.f32 %v3978_v51  ;;  %v2236_v32 = vrot.slane %v3978_v51, 7 }
0x1191   :  { %3564 = vpow2.f32 %v2765_v57 }
0x119a   :  { %v3563_v53 = vpop.eup %3562 }
0x119b   :  { %1904 = vrot.lane.b32.xlu1 %v3563_v53, %s3632_s8  ;;  %v3565_v58 = vpop.eup %3564 }
0x119c   :  { %v1885_v59 = vadd.f32 1.0, %v3565_v58 }
0x119e   :  { %3566 = vrcp.f32 %v1885_v59 }
0x11a8   :  { %v3567_v60 = vpop.eup %3566 }
0x120d   :  { %v1905_v61 = vpop.permute.xlu1 %1904 }
0x120e   :  { %v1907_v62 = vmul.f32 %v3567_v60, %v1905_v61 }
0x1210   :  { %v1909_v63 = vrot.slane %v1907_v62, 5  ;;  %v3984_v0 = vsel %vm2610_vm6, %v3938_v12, %v1907_v62 }
0x1212   :  { %1910 = vrot.lane.b32.xlu0 %v1909_v63, %s3634_s2 }
0x1284   :  { %v1911_v1 = vpop.permute.xlu0 %1910 }
0x1285   :  { %3173 = vmatmul.mubr.msk.f32.vlgmr.msra.gmra.mrb[20].mxu1 %vm36_vm1, %v1911_v1  ;;  %3184 = vmatmul.mubr.msk.f32.vlgmr.msra.gmra.mrb[22].mxu0 %vm36_vm1, %v1911_v1 }
0x1286   :  { %3403 = vmatpush3.bf16.msra.mxu1 %v3739_v35  ;;  %3409 = vmatpush3.bf16.msra.mxu0 %v3761_v52 }
0x1287   :  { %3404 = vmatprep.subr.bf16.mxu1 %v3629_v3  ;;  %3410 = vmatprep.subr.bf16.mxu0 %v3629_v3 }
0x1288   :  { %3194 = vmatprep.mubr.msk.f32.mxu1 %vm3630_vm0, %v3631_v6  ;;  %3205 = vmatprep.mubr.msk.f32.mxu0 %vm3630_vm0, %v3631_v6 }
0x128a   :  { %3406 = vmatpush3.bf16.msra.mxu1 %v3742_v39  ;;  %3412 = vmatpush3.bf16.msra.mxu0 %v3768_v55 }
0x128b   :  { %3419 = vmatprep.subr.bf16.mxu0 %v3629_v3  ;;  %3413 = vmatprep.subr.bf16.mxu1 %v3629_v3 }
0x128d   :  { %3195 = vmatmul.mubr.msk.f32.vlgmr.msra.gmra.mrb[22].mxu1 %vm36_vm1, %v1911_v1  ;;  %3206 = vmatmul.mubr.msk.f32.vlgmr.msra.gmra.mrb[24].mxu0 %vm36_vm1, %v1911_v1 }
0x128e   :  { %3421 = vmatpush3.bf16.msra.mxu0 %v3749_v46  ;;  %3415 = vmatpush3.bf16.msra.mxu1 %v3710_v17 }
0x128f   :  { %3422 = vmatprep.subr.bf16.mxu0 %v3629_v3  ;;  %3416 = vmatprep.subr.bf16.mxu1 %v3629_v3 }
0x1290   :  { %3216 = vmatprep.mubr.msk.f32.mxu1 %vm3630_vm0, %v3631_v6  ;;  %3227 = vmatprep.mubr.msk.f32.mxu0 %vm3630_vm0, %v3631_v6 }
0x1292   :  { %3424 = vmatpush3.bf16.msra.mxu0 %v3752_v48  ;;  %3418 = vmatpush3.bf16.msra.mxu1 %v3724_v26 }
0x1293   :  { %3425 = vmatprep.subr.bf16.mxu1 %v3629_v3  ;;  %3431 = vmatprep.subr.bf16.mxu0 %v3629_v3 }
0x1358   :  { %v1980_v46 = vpop.f32.mrb[20].mxu1  ;;  %v2054_v17 = vpop.f32.mrb[22].mxu0 }
0x1359   :  { %v3174_v2 = vpop.f32.mrb[21].mxu1  ;;  %v3185_v4 = vpop.f32.mrb[23].mxu0  ;;  %v2059_v12 = vrot.slane %v2054_v17, 2  ;;  %v1985_v15 = vrot.slane %v1980_v46, 2 }
0x135b   :  { %v1987_v16 = vadd.f32 %v1985_v15, %v3700_v11 }
0x135d   :  { %v2770_v18 = vmul.f32 -1.442695, %v1987_v16 }
0x1360   :  { %v2130_v5 = vpop.f32.mrb[22].mxu1  ;;  %v2206_v7 = vpop.f32.mrb[24].mxu0 }
0x1361   :  { %v2135_v8 = vrot.slane %v2130_v5, 2  ;;  %v3196_v9 = vpop.f32.mrb[23].mxu1  ;;  %v3207_v10 = vpop.f32.mrb[25].mxu0  ;;  %v2211_v48 = vrot.slane %v2206_v7, 2 }
0x1363   :  { %2136 = vrot.lane.b32.xlu1 %v2135_v8, %s3632_s8 }
0x1367   :  { %2060 = vrot.lane.b32.xlu1 %v2059_v12, %s3634_s2 }
0x136b   :  { %2212 = vrot.lane.b32.xlu1 %v2211_v48, %s3633_s16 }
0x13d5   :  { %v2137_v26 = vpop.permute.xlu1 %2136 }
0x13d6   :  { %v2139_v13 = vadd.f32 %v2137_v26, %v3700_v11 }
0x13d8   :  { %3568 = vtanh.f32 %v2139_v13 }
0x13d9   :  { %3570 = vpow2.f32 %v2770_v18  ;;  %v2061_v24 = vpop.permute.xlu1 %2060  ;;  %v2627_v18 = vld [vmem:[%s4100_s4] sm:$0xff] }
0x13da   :  { %v2063_v25 = vadd.f32 %v2061_v24, %v3700_v11 }
0x13dc   :  { %v2771_v27 = vmul.f32 -1.442695, %v2063_v25 }
0x13dd   :  { %v2213_v37 = vpop.permute.xlu1 %2212 }
0x13de   :  { %v2215_v38 = vadd.f32 %v2213_v37, %v3700_v11 }
0x13e0   :  { %v2772_v40 = vmul.f32 -1.442695, %v2215_v38 }
0x13e2   :  { %v3569_v14 = vpop.eup %3568 }
0x13e3   :  { %2240 = vrot.lane.b32.xlu0 %v3569_v14, %s3632_s8  ;;  %v3571_v19 = vpop.eup %3570 }
0x13e4   :  { %v2219_v20 = vadd.f32 1.0, %v3571_v19  ;;  %v2628_v19 = vld [vmem:[%s4100_s4 + $0x8] sm:$0xff] }
0x13e6   :  { %3572 = vrcp.f32 %v2219_v20  ;;  %v2629_v20 = vld [vmem:[%s4100_s4 + $0x10] sm:$0xff] }
0x13e7   :  { %3574 = vpow2.f32 %v2771_v27 }
0x13f0   :  { %v3573_v21 = vpop.eup %3572 }
0x13f1   :  { %v3575_v28 = vpop.eup %3574 }
0x13f2   :  { %v2225_v29 = vadd.f32 1.0, %v3575_v28 }
0x13f4   :  { %3576 = vrcp.f32 %v2225_v29 }
0x13fe   :  { %v3577_v31 = vpop.eup %3576 }
0x13ff   :  { %v2238_v33 = vmul.f32 %v3577_v31, %v2236_v32 }
0x1455   :  { %v2241_v22 = vpop.permute.xlu0 %2240 }
0x1456   :  { %v2243_v23 = vmul.f32 %v3573_v21, %v2241_v22  ;;  %v3438_v21 = vpack.c.bf16 %v2628_v19, %v2627_v18  ;;  %v2630_v22 = vld [vmem:[%s4100_s4 + $0x18] sm:$0xff] }
0x1458   :  { %2245 = vrot.lane.b32.xlu0 %v2243_v23, %s3634_s2  ;;  %v3441_v23 = vpack.c.bf16 %v2630_v22, %v2629_v20 }
0x14ca   :  { %v2246_v34 = vpop.permute.xlu0 %2245 }
0x14cb   :  { %v4024_v30 = vadd.f32 %v2246_v34, %v2238_v33 }
0x14cd   :  { %3578 = vtanh.f32 %v4024_v30  ;;  %v2583_v26 = vrot.slane %v4024_v30, 7 }
0x14ce   :  { %3580 = vpow2.f32 %v2772_v40 }
0x14d7   :  { %v3579_v36 = vpop.eup %3578 }
0x14d8   :  { %2251 = vrot.lane.b32.xlu0 %v3579_v36, %s3632_s8  ;;  %v3581_v41 = vpop.eup %3580 }
0x14d9   :  { %v2232_v42 = vadd.f32 1.0, %v3581_v41 }
0x14db   :  { %3582 = vrcp.f32 %v2232_v42  ;;  %v2781_v42 = vld [vmem:[%s4101_s5] ss:$0 sm:$0xff] }
0x14e5   :  { %v3583_v43 = vpop.eup %3582 }
0x154a   :  { %v2252_v44 = vpop.permute.xlu0 %2251 }
0x154b   :  { %v2254_v45 = vmul.f32 %v3583_v43, %v2252_v44 }
0x154d   :  { %v2256_v47 = vrot.slane %v2254_v45, 6  ;;  %v4030_v49 = vsel %vm2612_vm7, %v3984_v0, %v2254_v45 }
0x154f   :  { %2257 = vrot.lane.b32.xlu1 %v2256_v47, %s3634_s2 }
0x15c1   :  { %v2258_v50 = vpop.permute.xlu1 %2257 }
0x15c2   :  { %3217 = vmatmul.mubr.msk.f32.vlgmr.msra.gmra.mrb[24].mxu1 %vm36_vm1, %v2258_v50  ;;  %3228 = vmatmul.mubr.msk.f32.vlgmr.msra.gmra.mrb[26].mxu0 %vm36_vm1, %v2258_v50 }
0x15c3   :  { %3427 = vmatpush3.bf16.msra.mxu1 %v3739_v35  ;;  %3433 = vmatpush3.bf16.msra.mxu0 %v3761_v52 }
0x15c4   :  { %3428 = vmatprep.subr.bf16.mxu1 %v3629_v3  ;;  %3434 = vmatprep.subr.bf16.mxu0 %v3629_v3 }
0x15c5   :  { %3238 = vmatprep.mubr.msk.f32.mxu1 %vm3630_vm0, %v3631_v6  ;;  %3249 = vmatprep.mubr.msk.f32.mxu0 %vm3630_vm0, %v3631_v6 }
0x15c7   :  { %3430 = vmatpush3.bf16.msra.mxu1 %v3742_v39  ;;  %3436 = vmatpush3.bf16.msra.mxu0 %v3768_v55 }
0x15c8   :  { %3437 = vmatprep.subr.bf16.mxu1 %v3629_v3 }
0x15ca   :  { %3239 = vmatmul.mubr.msk.f32.vlgmr.msra.gmra.mrb[26].mxu1 %vm36_vm1, %v2258_v50  ;;  %3250 = vmatmul.mubr.msk.f32.vlgmr.msra.gmra.mrb[28].mxu0 %vm36_vm1, %v2258_v50 }
0x15cb   :  { %3260 = vmatprep.mubr.msk.f32.mxu1 %vm3630_vm0, %v3631_v6  ;;  %v3604_v6 = vld [vmem:[%s4096_s0] sm:$0xff]  ;;  %3439 = vmatpush3.bf16.msra.mxu1 %v3438_v21 }
0x15cc   :  { %3440 = vmatprep.subr.bf16.mxu1 %v3629_v3 }
0x15cf   :  { %3442 = vmatpush3.bf16.msra.mxu1 %v3441_v23 }
0x1695   :  { %v2327_v35 = vpop.f32.mrb[24].mxu1  ;;  %v2401_v52 = vpop.f32.mrb[26].mxu0 }
0x1696   :  { %v3218_v51 = vpop.f32.mrb[25].mxu1  ;;  %v3229_v53 = vpop.f32.mrb[27].mxu0  ;;  %v2406_v55 = vrot.slane %v2401_v52, 1  ;;  %v2332_v63 = vrot.slane %v2327_v35, 1 }
0x1698   :  { %v2334_v0 = vadd.f32 %v2332_v63, %v3700_v11 }
0x169a   :  { %v2777_v1 = vmul.f32 -1.442695, %v2334_v0 }
0x169d   :  { %v2477_v54 = vpop.f32.mrb[26].mxu1  ;;  %v2553_v56 = vpop.f32.mrb[28].mxu0 }
0x169e   :  { %v2482_v57 = vrot.slane %v2477_v54, 1  ;;  %v3240_v58 = vpop.f32.mrb[27].mxu1  ;;  %v3251_v39 = vpop.f32.mrb[29].mxu0  ;;  %v2558_v59 = vrot.slane %v2553_v56, 1 }
0x16a0   :  { %2483 = vrot.lane.b32.xlu0 %v2482_v57, %s3632_s8 }
0x16a4   :  { %2407 = vrot.lane.b32.xlu0 %v2406_v55, %s3634_s2 }
0x16a8   :  { %2559 = vrot.lane.b32.xlu0 %v2558_v59, %s3633_s16 }
0x16ac   :  { %2623 = vrot.lane.b32.xlu0 %v3604_v6, %s3633_s16 }
0x1712   :  { %v2484_v60 = vpop.permute.xlu0 %2483 }
0x1713   :  { %v2486_v61 = vadd.f32 %v2484_v60, %v3700_v11 }
0x1715   :  { %3584 = vtanh.f32 %v2486_v61 }
0x1716   :  { %3586 = vpow2.f32 %v2777_v1  ;;  %v2408_v7 = vpop.permute.xlu0 %2407 }
0x1717   :  { %v2410_v8 = vadd.f32 %v2408_v7, %v3700_v11 }
0x1719   :  { %v2778_v9 = vmul.f32 -1.442695, %v2410_v8 }
0x171a   :  { %v2560_v24 = vpop.permute.xlu0 %2559 }
0x171b   :  { %v2562_v25 = vadd.f32 %v2560_v24, %v3700_v11 }
0x171d   :  { %v2779_v27 = vmul.f32 -1.442695, %v2562_v25 }
0x171e   :  { %v2624_v38 = vpop.permute.xlu0 %2623 }
0x171f   :  { %v3585_v62 = vpop.eup %3584 }
0x1720   :  { %2587 = vrot.lane.b32.xlu1 %v3585_v62, %s3632_s8  ;;  %v3587_v46 = vpop.eup %3586 }
0x1721   :  { %v2566_v17 = vadd.f32 1.0, %v3587_v46 }
0x1723   :  { %3588 = vrcp.f32 %v2566_v17 }
0x1724   :  { %3590 = vpow2.f32 %v2778_v9 }
0x172d   :  { %v3589_v2 = vpop.eup %3588 }
0x172e   :  { %v3591_v10 = vpop.eup %3590 }
0x172f   :  { %v2572_v12 = vadd.f32 1.0, %v3591_v10 }
0x1731   :  { %3592 = vrcp.f32 %v2572_v12 }
0x173b   :  { %v3593_v48 = vpop.eup %3592 }
0x173c   :  { %v2585_v13 = vmul.f32 %v3593_v48, %v2583_v26 }
0x1792   :  { %v2588_v4 = vpop.permute.xlu1 %2587 }
0x1793   :  { %v2590_v5 = vmul.f32 %v3589_v2, %v2588_v4 }
0x1795   :  { %2592 = vrot.lane.b32.xlu1 %v2590_v5, %s3634_s2 }
0x1807   :  { %v2593_v14 = vpop.permute.xlu1 %2592 }
0x1808   :  { %v2595_v15 = vadd.f32 %v2593_v14, %v2585_v13 }
0x180a   :  { %3594 = vtanh.f32 %v2595_v15 }
0x180b   :  { %3596 = vpow2.f32 %v2779_v27 }
0x1814   :  { %v3595_v16 = vpop.eup %3594 }
0x1815   :  { %2598 = vrot.lane.b32.xlu1 %v3595_v16, %s3632_s8  ;;  %v3597_v28 = vpop.eup %3596 }
0x1816   :  { %v2579_v29 = vadd.f32 1.0, %v3597_v28 }
0x1818   :  { %3598 = vrcp.f32 %v2579_v29 }
0x1822   :  { %v3599_v31 = vpop.eup %3598 }
0x1887   :  { %v2599_v32 = vpop.permute.xlu1 %2598 }
0x1888   :  { %v2601_v33 = vmul.f32 %v3599_v31, %v2599_v32 }
0x188a   :  { %v2615_v34 = vsel %vm2614_vm8, %v4030_v49, %v2601_v33 }
0x188b   :  { %v2780_v30 = vmul.f32 -1.442695, %v2615_v34 }
0x188d   :  { %3600 = vpow2.f32 %v2780_v30 }
0x1897   :  { %v3601_v36 = vpop.eup %3600 }
0x1898   :  { %v2619_v37 = vadd.f32 1.0, %v3601_v36 }
0x189a   :  { %3602 = vrcp.f32 %v2619_v37 }
0x18a4   :  { %v3603_v3 = vpop.eup %3602 }
0x18a5   :  { %v2622_v40 = vmul.f32 %v3603_v3, %v2615_v34 }
0x18a7   :  { %v2626_v11 = vadd.f32 %v2624_v38, %v2622_v40 }
0x18a9   :  { %2639 = vrot.lane.b32.xlu1 %v2626_v11, %s3634_s2 }
0x191b   :  { %v2640_v41 = vpop.permute.xlu1 %2639 }
0x191c   :  { %3261 = vmatmul.mubr.msk.f32.vlgmr.msra.gmra.mrb[28].mxu1 %vm36_vm1, %v2640_v41 }
0x19ef   :  { %v2709_v43 = vpop.f32.mrb[28].mxu1 }
0x19f0   :  { %v2710_v44 = vadd.f32 %v2781_v42, %v2709_v43  ;;  %v3262_v45 = vpop.f32.mrb[29].mxu1 }
0x19f2   :  { %2713 = vst [vmem:[#allocation2] sm:$0xff] %v2710_v44 }
0x19f3   :  { %3616 = shalt.err (!%p3613_p4)
}
0x19f4   :  { %s3617_s7 = scalar_lea.hbm %s4102_s6, 128 }
0x19f5   :  { %p3618_p5 = scmp.ne.s32.totalorder %s4102_s6, %s3617_s7  ;;  %p3621_p6 = scmp.lt.u32.totalorder %s3617_s7, %s4102_s6 }
0x19f7   :  { %p3623_p7 = pnand %p3621_p6, %p3618_p5 }
0x19f9   :  { %3626 = shalt.err (!%p3623_p7)
}
0x19fa   :  { %2723 = dma.vmem_to_hbm [thread:$0]  %s2721_s28, 128, %s4102_s6, [#allocation3]  }
0x19fb   :  { %3627 = dma.done.wait [#allocation3], 128  }
0x19fc   :  { %3628 = vsyncadd [#allocation3], 4294967168 }
0x19fd   :  { %2727 = vsyncpa [#allocation3], 1 }

</bundles_post_ra>
